<compile_context>
chip_gen: v5e
topology: v5e:2x2
jax: 0.10.0
libtpu: 0.0.40
codegen_flags: <defaults>
</compile_context>

<pallas_src>
import math
import functools

import jax
import jax.numpy as jnp
from jax.experimental import pallas as pl
from jax.experimental.pallas import tpu as pltpu


def _layer_norm(x, gamma, beta, eps):
    mu = jnp.mean(x, axis=-1, keepdims=True)
    var = jnp.mean(jnp.square(x - mu), axis=-1, keepdims=True)
    return (x - mu) * jax.lax.rsqrt(var + eps) * gamma + beta


def transformer_block_kernel(q_hm_ref, k_hm_ref, v_hm_ref, q_res_ref, bias_ref,
                             wq_ref, wk_ref, wv_ref, wo_ref, bo_ref,
                             ln1_g_ref, ln1_b_ref,
                             w1_ref, b1_ref, w2_ref, b2_ref,
                             ln2_g_ref, ln2_b_ref,
                             out_ref, *, eps, compute_dtype):
    f32 = jnp.float32
    cd = compute_dtype

    q_hm = q_hm_ref[...]                      # (H, TQ, D)  head-major query tile
    k_hm = k_hm_ref[...]                      # (H, LK, D)
    v_hm = v_hm_ref[...]                      # (H, LK, D)
    H, TQ, D = q_hm.shape
    LK = k_hm.shape[1]
    E = q_res_ref.shape[-1]
    # NOTE: the module scales scores by 1/sqrt(embedding_dim) (not head_dim); kept as-is.
    scale = 1.0 / math.sqrt(E)

    # ---- head projections: a single (H*rows, D) @ (D, D) matmul each (bf16 -> f32) ----
    wq = wq_ref[...].astype(cd)
    wk = wk_ref[...].astype(cd)
    wv = wv_ref[...].astype(cd)
    q_p = jnp.dot(q_hm.reshape(H * TQ, D).astype(cd), wq,
                  preferred_element_type=f32).reshape(H, TQ, D)
    k_p = jnp.dot(k_hm.reshape(H * LK, D).astype(cd), wk,
                  preferred_element_type=f32).reshape(H, LK, D)
    v_p = jnp.dot(v_hm.reshape(H * LK, D).astype(cd), wv,
                  preferred_element_type=f32).reshape(H, LK, D)

    # ---- scores + softmax (scale folded into the small (TQ, D) tensor) ----
    q_p = q_p * scale
    s = jnp.einsum("hqd,hkd->hqk", q_p.astype(cd), k_p.astype(cd),
                   preferred_element_type=f32)            # (H, TQ, LK)
    s = s + bias_ref[...][None, :, :]                     # additive mask bias (0 / -1e30)
    s = s - jnp.max(s, axis=-1, keepdims=True)
    p = jnp.exp(s)
    p = p * pl.reciprocal(jnp.sum(p, axis=-1, keepdims=True), approx=True)

    # ---- PV + output projection with head-split Wo^T (no concat / relayout) ----
    ao = jnp.einsum("hqk,hkd->hqd", p.astype(cd), v_p.astype(cd),
                    preferred_element_type=f32)           # (H, TQ, D)
    attn_h = jnp.einsum("hqd,hde->hqe", ao.astype(cd), wo_ref[...].astype(cd),
                        preferred_element_type=f32)       # (H, TQ, E)
    attn = jnp.sum(attn_h, axis=0) + bo_ref[...].astype(f32)   # (TQ, E)

    # ---- residual + LayerNorm 1 (f32) ----
    x1 = q_res_ref[...].astype(f32) + attn
    sub1 = _layer_norm(x1, ln1_g_ref[...].astype(f32), ln1_b_ref[...].astype(f32), eps)
    # TODO(synk): nn.Dropout is identity in eval mode; stochastic dropout not applied.

    # ---- feed-forward (pre-transposed weights, bf16 MXU inputs, f32 accumulation) ----
    h1 = jnp.dot(sub1.astype(cd), w1_ref[...].astype(cd),
                 preferred_element_type=f32) + b1_ref[...].astype(f32)
    h1 = jnp.maximum(h1, 0.0)
    ff = jnp.dot(h1.astype(cd), w2_ref[...].astype(cd),
                 preferred_element_type=f32) + b2_ref[...].astype(f32)

    # ---- residual + LayerNorm 2 (f32) ----
    x2 = sub1 + ff
    out = _layer_norm(x2, ln2_g_ref[...].astype(f32), ln2_b_ref[...].astype(f32), eps)
    out_ref[...] = out.astype(out_ref.dtype)


def transformer_block(query, key, value, params, heads, *, mask_bias=None,
                      block_q=256, compute_dtype=jnp.bfloat16,
                      single_buffer_weights=True):
    """Fused TransformerBlock forward. query:(B,Lq,E) key/value:(B,Lk,E)."""
    B, Lq, E = query.shape
    Lk = key.shape[1]
    D = E // heads
    hidden = params["w1"].shape[0]

    # ---- layout plumbing done once in XLA (keeps transposes out of the hot loop) ----
    def to_head_major(x):
        b, l, _ = x.shape
        return x.reshape(b, l, heads, D).transpose(0, 2, 1, 3)     # (B, H, L, D)

    q_hm, k_hm, v_hm = to_head_major(query), to_head_major(key), to_head_major(value)

    wq_t = params["wq"].T                        # (D, D): x @ wq_t == x @ Wq^T
    wk_t = params["wk"].T
    wv_t = params["wv"].T
    wo_hm = params["wo"].T.reshape(heads, D, E)  # head-split Wo^T
    w1_t = params["w1"].T                        # (E, hidden)
    w2_t = params["w2"].T                        # (hidden, E)

    if mask_bias is None:
        bias = jnp.zeros((B, Lq, Lk), jnp.float32)
    else:
        bias = jnp.broadcast_to(mask_bias.astype(jnp.float32), (B, Lq, Lk))

    # query-row tiling: biggest multiple-of-8 tile <= block_q that divides Lq
    tq = Lq
    if Lq > block_q:
        for cand in range(block_q, 7, -8):
            if Lq % cand == 0:
                tq = cand
                break
    grid = (B, Lq // tq)

    kernel = functools.partial(transformer_block_kernel, eps=1e-5,
                               compute_dtype=compute_dtype)

    def run(weights_single_buffered):
        def wspec(shape):
            n = len(shape)
            idx = lambda b, qi: (0,) * n        # resident across the whole grid
            if weights_single_buffered:
                return pl.BlockSpec(shape, idx, pipeline_mode=pl.Buffered(1))
            return pl.BlockSpec(shape, idx)

        return pl.pallas_call(
            kernel,
            out_shape=jax.ShapeDtypeStruct((B, Lq, E), query.dtype),
            grid=grid,
            in_specs=[
                pl.BlockSpec((None, heads, tq, D), lambda b, qi: (b, 0, qi, 0)),
                pl.BlockSpec((None, heads, Lk, D), lambda b, qi: (b, 0, 0, 0)),
                pl.BlockSpec((None, heads, Lk, D), lambda b, qi: (b, 0, 0, 0)),
                pl.BlockSpec((None, tq, E), lambda b, qi: (b, qi, 0)),
                pl.BlockSpec((None, tq, Lk), lambda b, qi: (b, qi, 0)),
                wspec((D, D)), wspec((D, D)), wspec((D, D)),
                wspec((heads, D, E)), wspec((1, E)),
                wspec((1, E)), wspec((1, E)),
                wspec((E, hidden)), wspec((1, hidden)),
                wspec((hidden, E)), wspec((1, E)),
                wspec((1, E)), wspec((1, E)),
            ],
            out_specs=pl.BlockSpec((None, tq, E), lambda b, qi: (b, qi, 0)),
            compiler_params=pltpu.CompilerParams(
                dimension_semantics=("parallel", "parallel"),
                vmem_limit_bytes=32 * 1024 * 1024),
        )(q_hm, k_hm, v_hm, query, bias,
          wq_t, wk_t, wv_t, wo_hm, params["bo"],
          params["ln1_g"], params["ln1_b"],
          w1_t, params["b1"], w2_t, params["b2"],
          params["ln2_g"], params["ln2_b"])

    if single_buffer_weights:
        try:
            return run(True)
        except Exception:
            # TODO(synk): pl.Buffered(1) not accepted on this jax version; fall back
            # to the default double-buffered weight specs.
            pass
    return run(False)


def reference(query, key, value, params, heads, *, mask_bias=None,
              compute_dtype=jnp.bfloat16, eps=1e-5):
    """Pure-JAX replica of the PyTorch TransformerBlock forward, applying the same
    mixed-precision policy as the kernel (bf16 matmul inputs, f32 accumulation)."""
    B, Lq, E = query.shape
    Lk = key.shape[1]
    D = E // heads
    cd = compute_dtype
    f32 = jnp.float32
    scale = 1.0 / math.sqrt(E)

    q = query.reshape(B, Lq, heads, D)
    k = key.reshape(B, Lk, heads, D)
    v = value.reshape(B, Lk, heads, D)

    qp = jnp.einsum("bqhd,de->bqhe", q.astype(cd), params["wq"].T.astype(cd),
                    preferred_element_type=f32)
    kp = jnp.einsum("bkhd,de->bkhe", k.astype(cd), params["wk"].T.astype(cd),
                    preferred_element_type=f32)
    vp = jnp.einsum("bkhd,de->bkhe", v.astype(cd), params["wv"].T.astype(cd),
                    preferred_element_type=f32)

    qp = qp * scale
    s = jnp.einsum("bqhd,bkhd->bhqk", qp.astype(cd), kp.astype(cd),
                   preferred_element_type=f32)
    if mask_bias is not None:
        s = s + mask_bias[:, None, :, :].astype(f32)
    p = jax.nn.softmax(s, axis=-1)
    ao = jnp.einsum("bhqk,bkhd->bqhd", p.astype(cd), vp.astype(cd),
                    preferred_element_type=f32).reshape(B, Lq, E)
    attn = jnp.einsum("bqe,ef->bqf", ao.astype(cd), params["wo"].T.astype(cd),
                      preferred_element_type=f32) + params["bo"][0]

    def ln(x, g, b):
        mu = x.mean(-1, keepdims=True)
        var = ((x - mu) ** 2).mean(-1, keepdims=True)
        return (x - mu) * jax.lax.rsqrt(var + eps) * g[0] + b[0]

    sub1 = ln(query.astype(f32) + attn, params["ln1_g"], params["ln1_b"])
    h1 = jnp.maximum(
        jnp.einsum("bqe,eh->bqh", sub1.astype(cd), params["w1"].T.astype(cd),
                   preferred_element_type=f32) + params["b1"][0], 0.0)
    ff = jnp.einsum("bqh,he->bqe", h1.astype(cd), params["w2"].T.astype(cd),
                    preferred_element_type=f32) + params["b2"][0]
    return ln(sub1 + ff, params["ln2_g"], params["ln2_b"])


def init_params(key, embedding_dim, heads, multiplier):
    D = embedding_dim // heads
    hidden = embedding_dim * multiplier
    ks = jax.random.split(key, 8)

    def unif(k, shape, fan_in):
        bound = 1.0 / math.sqrt(fan_in)
        return jax.random.uniform(k, shape, jnp.float32, -bound, bound)

    return {
        "wq": unif(ks[0], (D, D), D),
        "wk": unif(ks[1], (D, D), D),
        "wv": unif(ks[2], (D, D), D),
        "wo": unif(ks[3], (embedding_dim, embedding_dim), embedding_dim),
        "bo": unif(ks[4], (1, embedding_dim), embedding_dim),
        "ln1_g": jnp.ones((1, embedding_dim), jnp.float32),
        "ln1_b": jnp.zeros((1, embedding_dim), jnp.float32),
        "ln2_g": jnp.ones((1, embedding_dim), jnp.float32),
        "ln2_b": jnp.zeros((1, embedding_dim), jnp.float32),
        "w1": unif(ks[5], (hidden, embedding_dim), embedding_dim),
        "b1": unif(ks[6], (1, hidden), embedding_dim),
        "w2": unif(ks[7], (embedding_dim, hidden), hidden),
        "b2": jnp.zeros((1, embedding_dim), jnp.float32),
    }


if __name__ == "__main__":
    B, L, E, heads, multiplier = 2, 8, 32, 4, 4

    root = jax.random.PRNGKey(0)
    kq, kk, kv, kp = jax.random.split(root, 4)
    query = jax.random.normal(kq, (B, L, E), jnp.float32)
    key_t = jax.random.normal(kk, (B, L, E), jnp.float32)
    value = jax.random.normal(kv, (B, L, E), jnp.float32)
    params = init_params(kp, E, heads, multiplier)

    # 1) encoder-style (unmasked) block
    out = jax.block_until_ready(transformer_block(query, key_t, value, params, heads))
    ref = reference(query, key_t, value, params, heads)
    err = float(jnp.max(jnp.abs(out - ref)))
    assert err < 2e-2, f"unmasked mismatch: max abs err {err}"

    # 2) decoder-style self-attention with a causal mask (additive -inf-like bias)
    causal = jnp.tril(jnp.ones((L, L), dtype=bool))
    causal_bias = jnp.where(causal, 0.0, -1e30).astype(jnp.float32)
    causal_bias = jnp.broadcast_to(causal_bias[None], (B, L, L))
    out_m = jax.block_until_ready(
        transformer_block(query, query, query, params, heads, mask_bias=causal_bias))
    ref_m = reference(query, query, query, params, heads, mask_bias=causal_bias)
    err_m = float(jnp.max(jnp.abs(out_m - ref_m)))
    assert err_m < 2e-2, f"masked mismatch: max abs err {err_m}"

    print("KERNEL_OK")
</pallas_src>

<mosaic_0001>
module attributes {stable_mosaic.version = 11 : i64} {
  func.func @transformer_block_kernel(%arg0: i32, %arg1: i32, %arg2: memref<1x4x8x8xf32, #tpu.memory_space<vmem>>, %arg3: memref<1x4x8x8xf32, #tpu.memory_space<vmem>>, %arg4: memref<1x4x8x8xf32, #tpu.memory_space<vmem>>, %arg5: memref<1x8x32xf32, #tpu.memory_space<vmem>>, %arg6: memref<1x8x8xf32, #tpu.memory_space<vmem>>, %arg7: memref<8x8xf32, #tpu.memory_space<vmem>>, %arg8: memref<8x8xf32, #tpu.memory_space<vmem>>, %arg9: memref<8x8xf32, #tpu.memory_space<vmem>>, %arg10: memref<4x8x32xf32, #tpu.memory_space<vmem>>, %arg11: memref<1x32xf32, #tpu.memory_space<vmem>>, %arg12: memref<1x32xf32, #tpu.memory_space<vmem>>, %arg13: memref<1x32xf32, #tpu.memory_space<vmem>>, %arg14: memref<32x128xf32, #tpu.memory_space<vmem>>, %arg15: memref<1x128xf32, #tpu.memory_space<vmem>>, %arg16: memref<128x32xf32, #tpu.memory_space<vmem>>, %arg17: memref<1x32xf32, #tpu.memory_space<vmem>>, %arg18: memref<1x32xf32, #tpu.memory_space<vmem>>, %arg19: memref<1x32xf32, #tpu.memory_space<vmem>>, %arg20: memref<1x8x32xf32, #tpu.memory_space<vmem>>) attributes {dimension_semantics = [#tpu.dimension_semantics<parallel>, #tpu.dimension_semantics<parallel>], iteration_bounds = array<i64: 2, 1>, scalar_prefetch = 0 : i64, scratch_operands = 0 : i64, tpu.core_type = #tpu.core_type<tc>, window_params = [{transform_indices = @transform_0, window_bounds = array<i64: 1, 4, 8, 8>}, {transform_indices = @transform_1, window_bounds = array<i64: 1, 4, 8, 8>}, {transform_indices = @transform_2, window_bounds = array<i64: 1, 4, 8, 8>}, {transform_indices = @transform_3, window_bounds = array<i64: 1, 8, 32>}, {transform_indices = @transform_4, window_bounds = array<i64: 1, 8, 8>}, {pipeline_mode = #tpu.pipeline_mode<synchronous>, transform_indices = @transform_5, window_bounds = array<i64: 8, 8>}, {pipeline_mode = #tpu.pipeline_mode<synchronous>, transform_indices = @transform_6, window_bounds = array<i64: 8, 8>}, {pipeline_mode = #tpu.pipeline_mode<synchronous>, transform_indices = @transform_7, window_bounds = array<i64: 8, 8>}, {pipeline_mode = #tpu.pipeline_mode<synchronous>, transform_indices = @transform_8, window_bounds = array<i64: 4, 8, 32>}, {pipeline_mode = #tpu.pipeline_mode<synchronous>, transform_indices = @transform_9, window_bounds = array<i64: 1, 32>}, {pipeline_mode = #tpu.pipeline_mode<synchronous>, transform_indices = @transform_10, window_bounds = array<i64: 1, 32>}, {pipeline_mode = #tpu.pipeline_mode<synchronous>, transform_indices = @transform_11, window_bounds = array<i64: 1, 32>}, {pipeline_mode = #tpu.pipeline_mode<synchronous>, transform_indices = @transform_12, window_bounds = array<i64: 32, 128>}, {pipeline_mode = #tpu.pipeline_mode<synchronous>, transform_indices = @transform_13, window_bounds = array<i64: 1, 128>}, {pipeline_mode = #tpu.pipeline_mode<synchronous>, transform_indices = @transform_14, window_bounds = array<i64: 128, 32>}, {pipeline_mode = #tpu.pipeline_mode<synchronous>, transform_indices = @transform_15, window_bounds = array<i64: 1, 32>}, {pipeline_mode = #tpu.pipeline_mode<synchronous>, transform_indices = @transform_16, window_bounds = array<i64: 1, 32>}, {pipeline_mode = #tpu.pipeline_mode<synchronous>, transform_indices = @transform_17, window_bounds = array<i64: 1, 32>}, {transform_indices = @transform_18, window_bounds = array<i64: 1, 8, 32>}]} {
    %c0 = arith.constant 0 : index
    %c0_0 = arith.constant 0 : index
    %c0_1 = arith.constant 0 : index
    %c0_2 = arith.constant 0 : index
    %0 = vector.load %arg2[%c0, %c0_0, %c0_1, %c0_2] : memref<1x4x8x8xf32, #tpu.memory_space<vmem>>, vector<1x4x8x8xf32>
    %1 = vector.shape_cast %0 : vector<1x4x8x8xf32> to vector<4x8x8xf32>
    %c0_3 = arith.constant 0 : index
    %c0_4 = arith.constant 0 : index
    %c0_5 = arith.constant 0 : index
    %c0_6 = arith.constant 0 : index
    %2 = vector.load %arg3[%c0_3, %c0_4, %c0_5, %c0_6] : memref<1x4x8x8xf32, #tpu.memory_space<vmem>>, vector<1x4x8x8xf32>
    %3 = vector.shape_cast %2 : vector<1x4x8x8xf32> to vector<4x8x8xf32>
    %c0_7 = arith.constant 0 : index
    %c0_8 = arith.constant 0 : index
    %c0_9 = arith.constant 0 : index
    %c0_10 = arith.constant 0 : index
    %4 = vector.load %arg4[%c0_7, %c0_8, %c0_9, %c0_10] : memref<1x4x8x8xf32, #tpu.memory_space<vmem>>, vector<1x4x8x8xf32>
    %5 = vector.shape_cast %4 : vector<1x4x8x8xf32> to vector<4x8x8xf32>
    %c0_11 = arith.constant 0 : index
    %c0_12 = arith.constant 0 : index
    %6 = vector.load %arg7[%c0_11, %c0_12] : memref<8x8xf32, #tpu.memory_space<vmem>>, vector<8x8xf32>
    %7 = arith.truncf %6 : vector<8x8xf32> to vector<8x8xbf16>
    %c0_13 = arith.constant 0 : index
    %c0_14 = arith.constant 0 : index
    %8 = vector.load %arg8[%c0_13, %c0_14] : memref<8x8xf32, #tpu.memory_space<vmem>>, vector<8x8xf32>
    %9 = arith.truncf %8 : vector<8x8xf32> to vector<8x8xbf16>
    %c0_15 = arith.constant 0 : index
    %c0_16 = arith.constant 0 : index
    %10 = vector.load %arg9[%c0_15, %c0_16] : memref<8x8xf32, #tpu.memory_space<vmem>>, vector<8x8xf32>
    %11 = arith.truncf %10 : vector<8x8xf32> to vector<8x8xbf16>
    %12 = vector.shape_cast %1 : vector<4x8x8xf32> to vector<32x8xf32>
    %13 = arith.truncf %12 : vector<32x8xf32> to vector<32x8xbf16>
    %cst = arith.constant dense<0.000000e+00> : vector<32x8xf32>
    %14 = tpu.matmul %13, %7, %cst {dimension_numbers = #tpu.dot_dimension_numbers<[1], [0], [0], [1], [0, 0, 1, 1], [], []>} : vector<32x8xbf16>, vector<8x8xbf16>, vector<32x8xf32> -> vector<32x8xf32>
    %15 = vector.shape_cast %14 : vector<32x8xf32> to vector<4x8x8xf32>
    %16 = vector.shape_cast %3 : vector<4x8x8xf32> to vector<32x8xf32>
    %17 = arith.truncf %16 : vector<32x8xf32> to vector<32x8xbf16>
    %cst_17 = arith.constant dense<0.000000e+00> : vector<32x8xf32>
    %18 = tpu.matmul %17, %9, %cst_17 {dimension_numbers = #tpu.dot_dimension_numbers<[1], [0], [0], [1], [0, 0, 1, 1], [], []>} : vector<32x8xbf16>, vector<8x8xbf16>, vector<32x8xf32> -> vector<32x8xf32>
    %19 = vector.shape_cast %18 : vector<32x8xf32> to vector<4x8x8xf32>
    %20 = vector.shape_cast %5 : vector<4x8x8xf32> to vector<32x8xf32>
    %21 = arith.truncf %20 : vector<32x8xf32> to vector<32x8xbf16>
    %cst_18 = arith.constant dense<0.000000e+00> : vector<32x8xf32>
    %22 = tpu.matmul %21, %11, %cst_18 {dimension_numbers = #tpu.dot_dimension_numbers<[1], [0], [0], [1], [0, 0, 1, 1], [], []>} : vector<32x8xbf16>, vector<8x8xbf16>, vector<32x8xf32> -> vector<32x8xf32>
    %23 = vector.shape_cast %22 : vector<32x8xf32> to vector<4x8x8xf32>
    %cst_19 = arith.constant 0.176776692 : f32
    %24 = vector.broadcast %cst_19 : f32 to vector<4x8x8xf32>
    %25 = arith.mulf %15, %24 : vector<4x8x8xf32>
    %26 = arith.truncf %25 : vector<4x8x8xf32> to vector<4x8x8xbf16>
    %27 = arith.truncf %19 : vector<4x8x8xf32> to vector<4x8x8xbf16>
    "tpu.trace_start"() <{level = 10 : i32, message = "hqd,hkd->hqk"}> : () -> ()
    %cst_20 = arith.constant dense<0.000000e+00> : vector<4x8x8xf32>
    %28 = tpu.matmul %26, %27, %cst_20 {dimension_numbers = #tpu.dot_dimension_numbers<[2], [2], [1], [1], [0, 0, 0, 1, 1, 1], [0], [0]>} : vector<4x8x8xbf16>, vector<4x8x8xbf16>, vector<4x8x8xf32> -> vector<4x8x8xf32>
    "tpu.trace_stop"() : () -> ()
    %c0_21 = arith.constant 0 : index
    %c0_22 = arith.constant 0 : index
    %c0_23 = arith.constant 0 : index
    %29 = vector.load %arg6[%c0_21, %c0_22, %c0_23] : memref<1x8x8xf32, #tpu.memory_space<vmem>>, vector<1x8x8xf32>
    %30 = vector.shape_cast %29 : vector<1x8x8xf32> to vector<8x8xf32>
    %31 = vector.shape_cast %30 : vector<8x8xf32> to vector<1x8x8xf32>
    %32 = vector.broadcast %31 : vector<1x8x8xf32> to vector<4x8x8xf32>
    %33 = arith.addf %28, %32 : vector<4x8x8xf32>
    %cst_24 = arith.constant dense<0xFF800000> : vector<4x8xf32>
    %34 = vector.multi_reduction <maximumf>, %33, %cst_24 [2] : vector<4x8x8xf32> to vector<4x8xf32>
    %35 = vector.shape_cast %34 : vector<4x8xf32> to vector<4x8x1xf32>
    %36 = vector.broadcast %35 : vector<4x8x1xf32> to vector<4x8x8xf32>
    %37 = arith.subf %33, %36 : vector<4x8x8xf32>
    %38 = math.exp %37 : vector<4x8x8xf32>
    %cst_25 = arith.constant dense<0.000000e+00> : vector<4x8xf32>
    %39 = vector.multi_reduction <add>, %38, %cst_25 [2] : vector<4x8x8xf32> to vector<4x8xf32>
    %40 = vector.shape_cast %39 : vector<4x8xf32> to vector<4x8x1xf32>
    %41 = tpu.reciprocal %40 {approx = true} : vector<4x8x1xf32> -> vector<4x8x1xf32>
    %42 = vector.broadcast %41 : vector<4x8x1xf32> to vector<4x8x8xf32>
    %43 = arith.mulf %38, %42 : vector<4x8x8xf32>
    %44 = arith.truncf %43 : vector<4x8x8xf32> to vector<4x8x8xbf16>
    %45 = arith.truncf %23 : vector<4x8x8xf32> to vector<4x8x8xbf16>
    "tpu.trace_start"() <{level = 10 : i32, message = "hqk,hkd->hqd"}> : () -> ()
    %cst_26 = arith.constant dense<0.000000e+00> : vector<4x8x8xf32>
    %46 = tpu.matmul %44, %45, %cst_26 {dimension_numbers = #tpu.dot_dimension_numbers<[2], [1], [1], [2], [0, 0, 0, 1, 1, 2], [0], [0]>} : vector<4x8x8xbf16>, vector<4x8x8xbf16>, vector<4x8x8xf32> -> vector<4x8x8xf32>
    "tpu.trace_stop"() : () -> ()
    %47 = arith.truncf %46 : vector<4x8x8xf32> to vector<4x8x8xbf16>
    %c0_27 = arith.constant 0 : index
    %c0_28 = arith.constant 0 : index
    %c0_29 = arith.constant 0 : index
    %48 = vector.load %arg10[%c0_27, %c0_28, %c0_29] : memref<4x8x32xf32, #tpu.memory_space<vmem>>, vector<4x8x32xf32>
    %49 = arith.truncf %48 : vector<4x8x32xf32> to vector<4x8x32xbf16>
    "tpu.trace_start"() <{level = 10 : i32, message = "hqd,hde->hqe"}> : () -> ()
    %cst_30 = arith.constant dense<0.000000e+00> : vector<4x8x32xf32>
    %50 = tpu.matmul %47, %49, %cst_30 {dimension_numbers = #tpu.dot_dimension_numbers<[2], [1], [1], [2], [0, 0, 0, 1, 1, 2], [0], [0]>} : vector<4x8x8xbf16>, vector<4x8x32xbf16>, vector<4x8x32xf32> -> vector<4x8x32xf32>
    "tpu.trace_stop"() : () -> ()
    %cst_31 = arith.constant dense<0.000000e+00> : vector<8x32xf32>
    %51 = vector.multi_reduction <add>, %50, %cst_31 [0] : vector<4x8x32xf32> to vector<8x32xf32>
    %c0_32 = arith.constant 0 : index
    %c0_33 = arith.constant 0 : index
    %52 = vector.load %arg11[%c0_32, %c0_33] : memref<1x32xf32, #tpu.memory_space<vmem>>, vector<1x32xf32>
    %53 = vector.broadcast %52 : vector<1x32xf32> to vector<8x32xf32>
    %54 = arith.addf %51, %53 : vector<8x32xf32>
    %c0_34 = arith.constant 0 : index
    %c0_35 = arith.constant 0 : index
    %c0_36 = arith.constant 0 : index
    %55 = vector.load %arg5[%c0_34, %c0_35, %c0_36] : memref<1x8x32xf32, #tpu.memory_space<vmem>>, vector<1x8x32xf32>
    %56 = vector.shape_cast %55 : vector<1x8x32xf32> to vector<8x32xf32>
    %57 = arith.addf %56, %54 : vector<8x32xf32>
    %c0_37 = arith.constant 0 : index
    %c0_38 = arith.constant 0 : index
    %58 = vector.load %arg12[%c0_37, %c0_38] : memref<1x32xf32, #tpu.memory_space<vmem>>, vector<1x32xf32>
    %c0_39 = arith.constant 0 : index
    %c0_40 = arith.constant 0 : index
    %59 = vector.load %arg13[%c0_39, %c0_40] : memref<1x32xf32, #tpu.memory_space<vmem>>, vector<1x32xf32>
    %cst_41 = arith.constant dense<0.000000e+00> : vector<8xf32>
    %60 = vector.multi_reduction <add>, %57, %cst_41 [1] : vector<8x32xf32> to vector<8xf32>
    %61 = vector.shape_cast %60 : vector<8xf32> to vector<8x1xf32>
    %cst_42 = arith.constant 3.200000e+01 : f32
    %62 = vector.broadcast %cst_42 : f32 to vector<8x1xf32>
    %63 = arith.divf %61, %62 : vector<8x1xf32>
    %64 = vector.broadcast %63 : vector<8x1xf32> to vector<8x32xf32>
    %65 = arith.subf %57, %64 : vector<8x32xf32>
    %66 = arith.mulf %65, %65 : vector<8x32xf32>
    %cst_43 = arith.constant dense<0.000000e+00> : vector<8xf32>
    %67 = vector.multi_reduction <add>, %66, %cst_43 [1] : vector<8x32xf32> to vector<8xf32>
    %68 = vector.shape_cast %67 : vector<8xf32> to vector<8x1xf32>
    %cst_44 = arith.constant 3.200000e+01 : f32
    %69 = vector.broadcast %cst_44 : f32 to vector<8x1xf32>
    %70 = arith.divf %68, %69 : vector<8x1xf32>
    %71 = vector.broadcast %63 : vector<8x1xf32> to vector<8x32xf32>
    %72 = arith.subf %57, %71 : vector<8x32xf32>
    %cst_45 = arith.constant 9.99999974E-6 : f32
    %73 = vector.broadcast %cst_45 : f32 to vector<8x1xf32>
    %74 = arith.addf %70, %73 : vector<8x1xf32>
    %75 = math.rsqrt %74 : vector<8x1xf32>
    %76 = vector.broadcast %75 : vector<8x1xf32> to vector<8x32xf32>
    %77 = arith.mulf %72, %76 : vector<8x32xf32>
    %78 = vector.broadcast %58 : vector<1x32xf32> to vector<8x32xf32>
    %79 = arith.mulf %77, %78 : vector<8x32xf32>
    %80 = vector.broadcast %59 : vector<1x32xf32> to vector<8x32xf32>
    %81 = arith.addf %79, %80 : vector<8x32xf32>
    %82 = arith.truncf %81 : vector<8x32xf32> to vector<8x32xbf16>
    %c0_46 = arith.constant 0 : index
    %c0_47 = arith.constant 0 : index
    %83 = vector.load %arg14[%c0_46, %c0_47] : memref<32x128xf32, #tpu.memory_space<vmem>>, vector<32x128xf32>
    %84 = arith.truncf %83 : vector<32x128xf32> to vector<32x128xbf16>
    %cst_48 = arith.constant dense<0.000000e+00> : vector<8x128xf32>
    %85 = tpu.matmul %82, %84, %cst_48 {dimension_numbers = #tpu.dot_dimension_numbers<[1], [0], [0], [1], [0, 0, 1, 1], [], []>} : vector<8x32xbf16>, vector<32x128xbf16>, vector<8x128xf32> -> vector<8x128xf32>
    %c0_49 = arith.constant 0 : index
    %c0_50 = arith.constant 0 : index
    %86 = vector.load %arg15[%c0_49, %c0_50] : memref<1x128xf32, #tpu.memory_space<vmem>>, vector<1x128xf32>
    %87 = vector.broadcast %86 : vector<1x128xf32> to vector<8x128xf32>
    %88 = arith.addf %85, %87 : vector<8x128xf32>
    %cst_51 = arith.constant 0.000000e+00 : f32
    %89 = vector.broadcast %cst_51 : f32 to vector<8x128xf32>
    %90 = arith.maximumf %88, %89 : vector<8x128xf32>
    %91 = arith.truncf %90 : vector<8x128xf32> to vector<8x128xbf16>
    %c0_52 = arith.constant 0 : index
    %c0_53 = arith.constant 0 : index
    %92 = vector.load %arg16[%c0_52, %c0_53] : memref<128x32xf32, #tpu.memory_space<vmem>>, vector<128x32xf32>
    %93 = arith.truncf %92 : vector<128x32xf32> to vector<128x32xbf16>
    %cst_54 = arith.constant dense<0.000000e+00> : vector<8x32xf32>
    %94 = tpu.matmul %91, %93, %cst_54 {dimension_numbers = #tpu.dot_dimension_numbers<[1], [0], [0], [1], [0, 0, 1, 1], [], []>} : vector<8x128xbf16>, vector<128x32xbf16>, vector<8x32xf32> -> vector<8x32xf32>
    %c0_55 = arith.constant 0 : index
    %c0_56 = arith.constant 0 : index
    %95 = vector.load %arg17[%c0_55, %c0_56] : memref<1x32xf32, #tpu.memory_space<vmem>>, vector<1x32xf32>
    %96 = vector.broadcast %95 : vector<1x32xf32> to vector<8x32xf32>
    %97 = arith.addf %94, %96 : vector<8x32xf32>
    %98 = arith.addf %81, %97 : vector<8x32xf32>
    %c0_57 = arith.constant 0 : index
    %c0_58 = arith.constant 0 : index
    %99 = vector.load %arg18[%c0_57, %c0_58] : memref<1x32xf32, #tpu.memory_space<vmem>>, vector<1x32xf32>
    %c0_59 = arith.constant 0 : index
    %c0_60 = arith.constant 0 : index
    %100 = vector.load %arg19[%c0_59, %c0_60] : memref<1x32xf32, #tpu.memory_space<vmem>>, vector<1x32xf32>
    %cst_61 = arith.constant dense<0.000000e+00> : vector<8xf32>
    %101 = vector.multi_reduction <add>, %98, %cst_61 [1] : vector<8x32xf32> to vector<8xf32>
    %102 = vector.shape_cast %101 : vector<8xf32> to vector<8x1xf32>
    %cst_62 = arith.constant 3.200000e+01 : f32
    %103 = vector.broadcast %cst_62 : f32 to vector<8x1xf32>
    %104 = arith.divf %102, %103 : vector<8x1xf32>
    %105 = vector.broadcast %104 : vector<8x1xf32> to vector<8x32xf32>
    %106 = arith.subf %98, %105 : vector<8x32xf32>
    %107 = arith.mulf %106, %106 : vector<8x32xf32>
    %cst_63 = arith.constant dense<0.000000e+00> : vector<8xf32>
    %108 = vector.multi_reduction <add>, %107, %cst_63 [1] : vector<8x32xf32> to vector<8xf32>
    %109 = vector.shape_cast %108 : vector<8xf32> to vector<8x1xf32>
    %cst_64 = arith.constant 3.200000e+01 : f32
    %110 = vector.broadcast %cst_64 : f32 to vector<8x1xf32>
    %111 = arith.divf %109, %110 : vector<8x1xf32>
    %112 = vector.broadcast %104 : vector<8x1xf32> to vector<8x32xf32>
    %113 = arith.subf %98, %112 : vector<8x32xf32>
    %cst_65 = arith.constant 9.99999974E-6 : f32
    %114 = vector.broadcast %cst_65 : f32 to vector<8x1xf32>
    %115 = arith.addf %111, %114 : vector<8x1xf32>
    %116 = math.rsqrt %115 : vector<8x1xf32>
    %117 = vector.broadcast %116 : vector<8x1xf32> to vector<8x32xf32>
    %118 = arith.mulf %113, %117 : vector<8x32xf32>
    %119 = vector.broadcast %99 : vector<1x32xf32> to vector<8x32xf32>
    %120 = arith.mulf %118, %119 : vector<8x32xf32>
    %121 = vector.broadcast %100 : vector<1x32xf32> to vector<8x32xf32>
    %122 = arith.addf %120, %121 : vector<8x32xf32>
    %c0_66 = arith.constant 0 : index
    %c0_67 = arith.constant 0 : index
    %c0_68 = arith.constant 0 : index
    %123 = vector.load %arg20[%c0_66, %c0_67, %c0_68] : memref<1x8x32xf32, #tpu.memory_space<vmem>>, vector<1x8x32xf32>
    %124 = vector.shape_cast %123 : vector<1x8x32xf32> to vector<8x32xf32>
    %125 = vector.shape_cast %122 : vector<8x32xf32> to vector<1x8x32xf32>
    tpu.vector_store %arg20[%c0_66, %c0_67, %c0_68], %125 {strides = array<i32>} : memref<1x8x32xf32, #tpu.memory_space<vmem>>, vector<1x8x32xf32>,
    return
  }
  func.func @transform_0(%arg0: i32, %arg1: i32) -> (i32, i32, i32, i32) {
    %c0_i32 = arith.constant 0 : i32
    %c0_i32_0 = arith.constant 0 : i32
    %c0_i32_1 = arith.constant 0 : i32
    return %arg0, %c0_i32, %arg1, %c0_i32_0 : i32, i32, i32, i32
  }
  func.func @transform_1(%arg0: i32, %arg1: i32) -> (i32, i32, i32, i32) {
    %c0_i32 = arith.constant 0 : i32
    %c0_i32_0 = arith.constant 0 : i32
    %c0_i32_1 = arith.constant 0 : i32
    %c0_i32_2 = arith.constant 0 : i32
    return %arg0, %c0_i32, %c0_i32_0, %c0_i32_1 : i32, i32, i32, i32
  }
  func.func @transform_2(%arg0: i32, %arg1: i32) -> (i32, i32, i32, i32) {
    %c0_i32 = arith.constant 0 : i32
    %c0_i32_0 = arith.constant 0 : i32
    %c0_i32_1 = arith.constant 0 : i32
    %c0_i32_2 = arith.constant 0 : i32
    return %arg0, %c0_i32, %c0_i32_0, %c0_i32_1 : i32, i32, i32, i32
  }
  func.func @transform_3(%arg0: i32, %arg1: i32) -> (i32, i32, i32) {
    %c0_i32 = arith.constant 0 : i32
    %c0_i32_0 = arith.constant 0 : i32
    return %arg0, %arg1, %c0_i32 : i32, i32, i32
  }
  func.func @transform_4(%arg0: i32, %arg1: i32) -> (i32, i32, i32) {
    %c0_i32 = arith.constant 0 : i32
    %c0_i32_0 = arith.constant 0 : i32
    return %arg0, %arg1, %c0_i32 : i32, i32, i32
  }
  func.func @transform_5(%arg0: i32, %arg1: i32) -> (i32, i32) {
    %c0_i32 = arith.constant 0 : i32
    %c0_i32_0 = arith.constant 0 : i32
    %c0_i32_1 = arith.constant 0 : i32
    return %c0_i32, %c0_i32_0 : i32, i32
  }
  func.func @transform_6(%arg0: i32, %arg1: i32) -> (i32, i32) {
    %c0_i32 = arith.constant 0 : i32
    %c0_i32_0 = arith.constant 0 : i32
    %c0_i32_1 = arith.constant 0 : i32
    return %c0_i32, %c0_i32_0 : i32, i32
  }
  func.func @transform_7(%arg0: i32, %arg1: i32) -> (i32, i32) {
    %c0_i32 = arith.constant 0 : i32
    %c0_i32_0 = arith.constant 0 : i32
    %c0_i32_1 = arith.constant 0 : i32
    return %c0_i32, %c0_i32_0 : i32, i32
  }
  func.func @transform_8(%arg0: i32, %arg1: i32) -> (i32, i32, i32) {
    %c0_i32 = arith.constant 0 : i32
    %c0_i32_0 = arith.constant 0 : i32
    %c0_i32_1 = arith.constant 0 : i32
    %c0_i32_2 = arith.constant 0 : i32
    return %c0_i32, %c0_i32_0, %c0_i32_1 : i32, i32, i32
  }
  func.func @transform_9(%arg0: i32, %arg1: i32) -> (i32, i32) {
    %c0_i32 = arith.constant 0 : i32
    %c0_i32_0 = arith.constant 0 : i32
    %c0_i32_1 = arith.constant 0 : i32
    return %c0_i32, %c0_i32_0 : i32, i32
  }
  func.func @transform_10(%arg0: i32, %arg1: i32) -> (i32, i32) {
    %c0_i32 = arith.constant 0 : i32
    %c0_i32_0 = arith.constant 0 : i32
    %c0_i32_1 = arith.constant 0 : i32
    return %c0_i32, %c0_i32_0 : i32, i32
  }
  func.func @transform_11(%arg0: i32, %arg1: i32) -> (i32, i32) {
    %c0_i32 = arith.constant 0 : i32
    %c0_i32_0 = arith.constant 0 : i32
    %c0_i32_1 = arith.constant 0 : i32
    return %c0_i32, %c0_i32_0 : i32, i32
  }
  func.func @transform_12(%arg0: i32, %arg1: i32) -> (i32, i32) {
    %c0_i32 = arith.constant 0 : i32
    %c0_i32_0 = arith.constant 0 : i32
    %c0_i32_1 = arith.constant 0 : i32
    return %c0_i32, %c0_i32_0 : i32, i32
  }
  func.func @transform_13(%arg0: i32, %arg1: i32) -> (i32, i32) {
    %c0_i32 = arith.constant 0 : i32
    %c0_i32_0 = arith.constant 0 : i32
    %c0_i32_1 = arith.constant 0 : i32
    return %c0_i32, %c0_i32_0 : i32, i32
  }
  func.func @transform_14(%arg0: i32, %arg1: i32) -> (i32, i32) {
    %c0_i32 = arith.constant 0 : i32
    %c0_i32_0 = arith.constant 0 : i32
    %c0_i32_1 = arith.constant 0 : i32
    return %c0_i32, %c0_i32_0 : i32, i32
  }
  func.func @transform_15(%arg0: i32, %arg1: i32) -> (i32, i32) {
    %c0_i32 = arith.constant 0 : i32
    %c0_i32_0 = arith.constant 0 : i32
    %c0_i32_1 = arith.constant 0 : i32
    return %c0_i32, %c0_i32_0 : i32, i32
  }
  func.func @transform_16(%arg0: i32, %arg1: i32) -> (i32, i32) {
    %c0_i32 = arith.constant 0 : i32
    %c0_i32_0 = arith.constant 0 : i32
    %c0_i32_1 = arith.constant 0 : i32
    return %c0_i32, %c0_i32_0 : i32, i32
  }
  func.func @transform_17(%arg0: i32, %arg1: i32) -> (i32, i32) {
    %c0_i32 = arith.constant 0 : i32
    %c0_i32_0 = arith.constant 0 : i32
    %c0_i32_1 = arith.constant 0 : i32
    return %c0_i32, %c0_i32_0 : i32, i32
  }
  func.func @transform_18(%arg0: i32, %arg1: i32) -> (i32, i32, i32) {
    %c0_i32 = arith.constant 0 : i32
    %c0_i32_0 = arith.constant 0 : i32
    return %arg0, %arg1, %c0_i32 : i32, i32, i32
  }
}

module attributes {stable_mosaic.version = 11 : i64} {
  func.func @transformer_block_kernel(%arg0: i32, %arg1: i32, %arg2: memref<1x4x8x8xf32, #tpu.memory_space<vmem>>, %arg3: memref<1x4x8x8xf32, #tpu.memory_space<vmem>>, %arg4: memref<1x4x8x8xf32, #tpu.memory_space<vmem>>, %arg5: memref<1x8x32xf32, #tpu.memory_space<vmem>>, %arg6: memref<1x8x8xf32, #tpu.memory_space<vmem>>, %arg7: memref<8x8xf32, #tpu.memory_space<vmem>>, %arg8: memref<8x8xf32, #tpu.memory_space<vmem>>, %arg9: memref<8x8xf32, #tpu.memory_space<vmem>>, %arg10: memref<4x8x32xf32, #tpu.memory_space<vmem>>, %arg11: memref<1x32xf32, #tpu.memory_space<vmem>>, %arg12: memref<1x32xf32, #tpu.memory_space<vmem>>, %arg13: memref<1x32xf32, #tpu.memory_space<vmem>>, %arg14: memref<32x128xf32, #tpu.memory_space<vmem>>, %arg15: memref<1x128xf32, #tpu.memory_space<vmem>>, %arg16: memref<128x32xf32, #tpu.memory_space<vmem>>, %arg17: memref<1x32xf32, #tpu.memory_space<vmem>>, %arg18: memref<1x32xf32, #tpu.memory_space<vmem>>, %arg19: memref<1x32xf32, #tpu.memory_space<vmem>>, %arg20: memref<1x8x32xf32, #tpu.memory_space<vmem>>) attributes {dimension_semantics = [#tpu.dimension_semantics<parallel>, #tpu.dimension_semantics<parallel>], iteration_bounds = array<i64: 2, 1>, scalar_prefetch = 0 : i64, scratch_operands = 0 : i64, tpu.core_type = #tpu.core_type<tc>, window_params = [{transform_indices = @transform_0, window_bounds = array<i64: 1, 4, 8, 8>}, {transform_indices = @transform_1, window_bounds = array<i64: 1, 4, 8, 8>}, {transform_indices = @transform_2, window_bounds = array<i64: 1, 4, 8, 8>}, {transform_indices = @transform_3, window_bounds = array<i64: 1, 8, 32>}, {transform_indices = @transform_4, window_bounds = array<i64: 1, 8, 8>}, {pipeline_mode = #tpu.pipeline_mode<synchronous>, transform_indices = @transform_5, window_bounds = array<i64: 8, 8>}, {pipeline_mode = #tpu.pipeline_mode<synchronous>, transform_indices = @transform_6, window_bounds = array<i64: 8, 8>}, {pipeline_mode = #tpu.pipeline_mode<synchronous>, transform_indices = @transform_7, window_bounds = array<i64: 8, 8>}, {pipeline_mode = #tpu.pipeline_mode<synchronous>, transform_indices = @transform_8, window_bounds = array<i64: 4, 8, 32>}, {pipeline_mode = #tpu.pipeline_mode<synchronous>, transform_indices = @transform_9, window_bounds = array<i64: 1, 32>}, {pipeline_mode = #tpu.pipeline_mode<synchronous>, transform_indices = @transform_10, window_bounds = array<i64: 1, 32>}, {pipeline_mode = #tpu.pipeline_mode<synchronous>, transform_indices = @transform_11, window_bounds = array<i64: 1, 32>}, {pipeline_mode = #tpu.pipeline_mode<synchronous>, transform_indices = @transform_12, window_bounds = array<i64: 32, 128>}, {pipeline_mode = #tpu.pipeline_mode<synchronous>, transform_indices = @transform_13, window_bounds = array<i64: 1, 128>}, {pipeline_mode = #tpu.pipeline_mode<synchronous>, transform_indices = @transform_14, window_bounds = array<i64: 128, 32>}, {pipeline_mode = #tpu.pipeline_mode<synchronous>, transform_indices = @transform_15, window_bounds = array<i64: 1, 32>}, {pipeline_mode = #tpu.pipeline_mode<synchronous>, transform_indices = @transform_16, window_bounds = array<i64: 1, 32>}, {pipeline_mode = #tpu.pipeline_mode<synchronous>, transform_indices = @transform_17, window_bounds = array<i64: 1, 32>}, {transform_indices = @transform_18, window_bounds = array<i64: 1, 8, 32>}]} {
    %c0 = arith.constant 0 : index
    %c0_0 = arith.constant 0 : index
    %c0_1 = arith.constant 0 : index
    %c0_2 = arith.constant 0 : index
    %0 = vector.load %arg2[%c0, %c0_0, %c0_1, %c0_2] : memref<1x4x8x8xf32, #tpu.memory_space<vmem>>, vector<1x4x8x8xf32>
    %1 = vector.shape_cast %0 : vector<1x4x8x8xf32> to vector<4x8x8xf32>
    %c0_3 = arith.constant 0 : index
    %c0_4 = arith.constant 0 : index
    %c0_5 = arith.constant 0 : index
    %c0_6 = arith.constant 0 : index
    %2 = vector.load %arg3[%c0_3, %c0_4, %c0_5, %c0_6] : memref<1x4x8x8xf32, #tpu.memory_space<vmem>>, vector<1x4x8x8xf32>
    %3 = vector.shape_cast %2 : vector<1x4x8x8xf32> to vector<4x8x8xf32>
    %c0_7 = arith.constant 0 : index
    %c0_8 = arith.constant 0 : index
    %c0_9 = arith.constant 0 : index
    %c0_10 = arith.constant 0 : index
    %4 = vector.load %arg4[%c0_7, %c0_8, %c0_9, %c0_10] : memref<1x4x8x8xf32, #tpu.memory_space<vmem>>, vector<1x4x8x8xf32>
    %5 = vector.shape_cast %4 : vector<1x4x8x8xf32> to vector<4x8x8xf32>
    %c0_11 = arith.constant 0 : index
    %c0_12 = arith.constant 0 : index
    %6 = vector.load %arg7[%c0_11, %c0_12] : memref<8x8xf32, #tpu.memory_space<vmem>>, vector<8x8xf32>
    %7 = arith.truncf %6 : vector<8x8xf32> to vector<8x8xbf16>
    %c0_13 = arith.constant 0 : index
    %c0_14 = arith.constant 0 : index
    %8 = vector.load %arg8[%c0_13, %c0_14] : memref<8x8xf32, #tpu.memory_space<vmem>>, vector<8x8xf32>
    %9 = arith.truncf %8 : vector<8x8xf32> to vector<8x8xbf16>
    %c0_15 = arith.constant 0 : index
    %c0_16 = arith.constant 0 : index
    %10 = vector.load %arg9[%c0_15, %c0_16] : memref<8x8xf32, #tpu.memory_space<vmem>>, vector<8x8xf32>
    %11 = arith.truncf %10 : vector<8x8xf32> to vector<8x8xbf16>
    %12 = vector.shape_cast %1 : vector<4x8x8xf32> to vector<32x8xf32>
    %13 = arith.truncf %12 : vector<32x8xf32> to vector<32x8xbf16>
    %cst = arith.constant dense<0.000000e+00> : vector<32x8xf32>
    %14 = tpu.matmul %13, %7, %cst {dimension_numbers = #tpu.dot_dimension_numbers<[1], [0], [0], [1], [0, 0, 1, 1], [], []>} : vector<32x8xbf16>, vector<8x8xbf16>, vector<32x8xf32> -> vector<32x8xf32>
    %15 = vector.shape_cast %14 : vector<32x8xf32> to vector<4x8x8xf32>
    %16 = vector.shape_cast %3 : vector<4x8x8xf32> to vector<32x8xf32>
    %17 = arith.truncf %16 : vector<32x8xf32> to vector<32x8xbf16>
    %cst_17 = arith.constant dense<0.000000e+00> : vector<32x8xf32>
    %18 = tpu.matmul %17, %9, %cst_17 {dimension_numbers = #tpu.dot_dimension_numbers<[1], [0], [0], [1], [0, 0, 1, 1], [], []>} : vector<32x8xbf16>, vector<8x8xbf16>, vector<32x8xf32> -> vector<32x8xf32>
    %19 = vector.shape_cast %18 : vector<32x8xf32> to vector<4x8x8xf32>
    %20 = vector.shape_cast %5 : vector<4x8x8xf32> to vector<32x8xf32>
    %21 = arith.truncf %20 : vector<32x8xf32> to vector<32x8xbf16>
    %cst_18 = arith.constant dense<0.000000e+00> : vector<32x8xf32>
    %22 = tpu.matmul %21, %11, %cst_18 {dimension_numbers = #tpu.dot_dimension_numbers<[1], [0], [0], [1], [0, 0, 1, 1], [], []>} : vector<32x8xbf16>, vector<8x8xbf16>, vector<32x8xf32> -> vector<32x8xf32>
    %23 = vector.shape_cast %22 : vector<32x8xf32> to vector<4x8x8xf32>
    %cst_19 = arith.constant 0.176776692 : f32
    %24 = vector.broadcast %cst_19 : f32 to vector<4x8x8xf32>
    %25 = arith.mulf %15, %24 : vector<4x8x8xf32>
    %26 = arith.truncf %25 : vector<4x8x8xf32> to vector<4x8x8xbf16>
    %27 = arith.truncf %19 : vector<4x8x8xf32> to vector<4x8x8xbf16>
    "tpu.trace_start"() <{level = 10 : i32, message = "hqd,hkd->hqk"}> : () -> ()
    %cst_20 = arith.constant dense<0.000000e+00> : vector<4x8x8xf32>
    %28 = tpu.matmul %26, %27, %cst_20 {dimension_numbers = #tpu.dot_dimension_numbers<[2], [2], [1], [1], [0, 0, 0, 1, 1, 1], [0], [0]>} : vector<4x8x8xbf16>, vector<4x8x8xbf16>, vector<4x8x8xf32> -> vector<4x8x8xf32>
    "tpu.trace_stop"() : () -> ()
    %c0_21 = arith.constant 0 : index
    %c0_22 = arith.constant 0 : index
    %c0_23 = arith.constant 0 : index
    %29 = vector.load %arg6[%c0_21, %c0_22, %c0_23] : memref<1x8x8xf32, #tpu.memory_space<vmem>>, vector<1x8x8xf32>
    %30 = vector.shape_cast %29 : vector<1x8x8xf32> to vector<8x8xf32>
    %31 = vector.shape_cast %30 : vector<8x8xf32> to vector<1x8x8xf32>
    %32 = vector.broadcast %31 : vector<1x8x8xf32> to vector<4x8x8xf32>
    %33 = arith.addf %28, %32 : vector<4x8x8xf32>
    %cst_24 = arith.constant dense<0xFF800000> : vector<4x8xf32>
    %34 = vector.multi_reduction <maximumf>, %33, %cst_24 [2] : vector<4x8x8xf32> to vector<4x8xf32>
    %35 = vector.shape_cast %34 : vector<4x8xf32> to vector<4x8x1xf32>
    %36 = vector.broadcast %35 : vector<4x8x1xf32> to vector<4x8x8xf32>
    %37 = arith.subf %33, %36 : vector<4x8x8xf32>
    %38 = math.exp %37 : vector<4x8x8xf32>
    %cst_25 = arith.constant dense<0.000000e+00> : vector<4x8xf32>
    %39 = vector.multi_reduction <add>, %38, %cst_25 [2] : vector<4x8x8xf32> to vector<4x8xf32>
    %40 = vector.shape_cast %39 : vector<4x8xf32> to vector<4x8x1xf32>
    %41 = tpu.reciprocal %40 {approx = true} : vector<4x8x1xf32> -> vector<4x8x1xf32>
    %42 = vector.broadcast %41 : vector<4x8x1xf32> to vector<4x8x8xf32>
    %43 = arith.mulf %38, %42 : vector<4x8x8xf32>
    %44 = arith.truncf %43 : vector<4x8x8xf32> to vector<4x8x8xbf16>
    %45 = arith.truncf %23 : vector<4x8x8xf32> to vector<4x8x8xbf16>
    "tpu.trace_start"() <{level = 10 : i32, message = "hqk,hkd->hqd"}> : () -> ()
    %cst_26 = arith.constant dense<0.000000e+00> : vector<4x8x8xf32>
    %46 = tpu.matmul %44, %45, %cst_26 {dimension_numbers = #tpu.dot_dimension_numbers<[2], [1], [1], [2], [0, 0, 0, 1, 1, 2], [0], [0]>} : vector<4x8x8xbf16>, vector<4x8x8xbf16>, vector<4x8x8xf32> -> vector<4x8x8xf32>
    "tpu.trace_stop"() : () -> ()
    %47 = arith.truncf %46 : vector<4x8x8xf32> to vector<4x8x8xbf16>
    %c0_27 = arith.constant 0 : index
    %c0_28 = arith.constant 0 : index
    %c0_29 = arith.constant 0 : index
    %48 = vector.load %arg10[%c0_27, %c0_28, %c0_29] : memref<4x8x32xf32, #tpu.memory_space<vmem>>, vector<4x8x32xf32>
    %49 = arith.truncf %48 : vector<4x8x32xf32> to vector<4x8x32xbf16>
    "tpu.trace_start"() <{level = 10 : i32, message = "hqd,hde->hqe"}> : () -> ()
    %cst_30 = arith.constant dense<0.000000e+00> : vector<4x8x32xf32>
    %50 = tpu.matmul %47, %49, %cst_30 {dimension_numbers = #tpu.dot_dimension_numbers<[2], [1], [1], [2], [0, 0, 0, 1, 1, 2], [0], [0]>} : vector<4x8x8xbf16>, vector<4x8x32xbf16>, vector<4x8x32xf32> -> vector<4x8x32xf32>
    "tpu.trace_stop"() : () -> ()
    %cst_31 = arith.constant dense<0.000000e+00> : vector<8x32xf32>
    %51 = vector.multi_reduction <add>, %50, %cst_31 [0] : vector<4x8x32xf32> to vector<8x32xf32>
    %c0_32 = arith.constant 0 : index
    %c0_33 = arith.constant 0 : index
    %52 = vector.load %arg11[%c0_32, %c0_33] : memref<1x32xf32, #tpu.memory_space<vmem>>, vector<1x32xf32>
    %53 = vector.broadcast %52 : vector<1x32xf32> to vector<8x32xf32>
    %54 = arith.addf %51, %53 : vector<8x32xf32>
    %c0_34 = arith.constant 0 : index
    %c0_35 = arith.constant 0 : index
    %c0_36 = arith.constant 0 : index
    %55 = vector.load %arg5[%c0_34, %c0_35, %c0_36] : memref<1x8x32xf32, #tpu.memory_space<vmem>>, vector<1x8x32xf32>
    %56 = vector.shape_cast %55 : vector<1x8x32xf32> to vector<8x32xf32>
    %57 = arith.addf %56, %54 : vector<8x32xf32>
    %c0_37 = arith.constant 0 : index
    %c0_38 = arith.constant 0 : index
    %58 = vector.load %arg12[%c0_37, %c0_38] : memref<1x32xf32, #tpu.memory_space<vmem>>, vector<1x32xf32>
    %c0_39 = arith.constant 0 : index
    %c0_40 = arith.constant 0 : index
    %59 = vector.load %arg13[%c0_39, %c0_40] : memref<1x32xf32, #tpu.memory_space<vmem>>, vector<1x32xf32>
    %cst_41 = arith.constant dense<0.000000e+00> : vector<8xf32>
    %60 = vector.multi_reduction <add>, %57, %cst_41 [1] : vector<8x32xf32> to vector<8xf32>
    %61 = vector.shape_cast %60 : vector<8xf32> to vector<8x1xf32>
    %cst_42 = arith.constant 3.200000e+01 : f32
    %62 = vector.broadcast %cst_42 : f32 to vector<8x1xf32>
    %63 = arith.divf %61, %62 : vector<8x1xf32>
    %64 = vector.broadcast %63 : vector<8x1xf32> to vector<8x32xf32>
    %65 = arith.subf %57, %64 : vector<8x32xf32>
    %66 = arith.mulf %65, %65 : vector<8x32xf32>
    %cst_43 = arith.constant dense<0.000000e+00> : vector<8xf32>
    %67 = vector.multi_reduction <add>, %66, %cst_43 [1] : vector<8x32xf32> to vector<8xf32>
    %68 = vector.shape_cast %67 : vector<8xf32> to vector<8x1xf32>
    %cst_44 = arith.constant 3.200000e+01 : f32
    %69 = vector.broadcast %cst_44 : f32 to vector<8x1xf32>
    %70 = arith.divf %68, %69 : vector<8x1xf32>
    %71 = vector.broadcast %63 : vector<8x1xf32> to vector<8x32xf32>
    %72 = arith.subf %57, %71 : vector<8x32xf32>
    %cst_45 = arith.constant 9.99999974E-6 : f32
    %73 = vector.broadcast %cst_45 : f32 to vector<8x1xf32>
    %74 = arith.addf %70, %73 : vector<8x1xf32>
    %75 = math.rsqrt %74 : vector<8x1xf32>
    %76 = vector.broadcast %75 : vector<8x1xf32> to vector<8x32xf32>
    %77 = arith.mulf %72, %76 : vector<8x32xf32>
    %78 = vector.broadcast %58 : vector<1x32xf32> to vector<8x32xf32>
    %79 = arith.mulf %77, %78 : vector<8x32xf32>
    %80 = vector.broadcast %59 : vector<1x32xf32> to vector<8x32xf32>
    %81 = arith.addf %79, %80 : vector<8x32xf32>
    %82 = arith.truncf %81 : vector<8x32xf32> to vector<8x32xbf16>
    %c0_46 = arith.constant 0 : index
    %c0_47 = arith.constant 0 : index
    %83 = vector.load %arg14[%c0_46, %c0_47] : memref<32x128xf32, #tpu.memory_space<vmem>>, vector<32x128xf32>
    %84 = arith.truncf %83 : vector<32x128xf32> to vector<32x128xbf16>
    %cst_48 = arith.constant dense<0.000000e+00> : vector<8x128xf32>
    %85 = tpu.matmul %82, %84, %cst_48 {dimension_numbers = #tpu.dot_dimension_numbers<[1], [0], [0], [1], [0, 0, 1, 1], [], []>} : vector<8x32xbf16>, vector<32x128xbf16>, vector<8x128xf32> -> vector<8x128xf32>
    %c0_49 = arith.constant 0 : index
    %c0_50 = arith.constant 0 : index
    %86 = vector.load %arg15[%c0_49, %c0_50] : memref<1x128xf32, #tpu.memory_space<vmem>>, vector<1x128xf32>
    %87 = vector.broadcast %86 : vector<1x128xf32> to vector<8x128xf32>
    %88 = arith.addf %85, %87 : vector<8x128xf32>
    %cst_51 = arith.constant 0.000000e+00 : f32
    %89 = vector.broadcast %cst_51 : f32 to vector<8x128xf32>
    %90 = arith.maximumf %88, %89 : vector<8x128xf32>
    %91 = arith.truncf %90 : vector<8x128xf32> to vector<8x128xbf16>
    %c0_52 = arith.constant 0 : index
    %c0_53 = arith.constant 0 : index
    %92 = vector.load %arg16[%c0_52, %c0_53] : memref<128x32xf32, #tpu.memory_space<vmem>>, vector<128x32xf32>
    %93 = arith.truncf %92 : vector<128x32xf32> to vector<128x32xbf16>
    %cst_54 = arith.constant dense<0.000000e+00> : vector<8x32xf32>
    %94 = tpu.matmul %91, %93, %cst_54 {dimension_numbers = #tpu.dot_dimension_numbers<[1], [0], [0], [1], [0, 0, 1, 1], [], []>} : vector<8x128xbf16>, vector<128x32xbf16>, vector<8x32xf32> -> vector<8x32xf32>
    %c0_55 = arith.constant 0 : index
    %c0_56 = arith.constant 0 : index
    %95 = vector.load %arg17[%c0_55, %c0_56] : memref<1x32xf32, #tpu.memory_space<vmem>>, vector<1x32xf32>
    %96 = vector.broadcast %95 : vector<1x32xf32> to vector<8x32xf32>
    %97 = arith.addf %94, %96 : vector<8x32xf32>
    %98 = arith.addf %81, %97 : vector<8x32xf32>
    %c0_57 = arith.constant 0 : index
    %c0_58 = arith.constant 0 : index
    %99 = vector.load %arg18[%c0_57, %c0_58] : memref<1x32xf32, #tpu.memory_space<vmem>>, vector<1x32xf32>
    %c0_59 = arith.constant 0 : index
    %c0_60 = arith.constant 0 : index
    %100 = vector.load %arg19[%c0_59, %c0_60] : memref<1x32xf32, #tpu.memory_space<vmem>>, vector<1x32xf32>
    %cst_61 = arith.constant dense<0.000000e+00> : vector<8xf32>
    %101 = vector.multi_reduction <add>, %98, %cst_61 [1] : vector<8x32xf32> to vector<8xf32>
    %102 = vector.shape_cast %101 : vector<8xf32> to vector<8x1xf32>
    %cst_62 = arith.constant 3.200000e+01 : f32
    %103 = vector.broadcast %cst_62 : f32 to vector<8x1xf32>
    %104 = arith.divf %102, %103 : vector<8x1xf32>
    %105 = vector.broadcast %104 : vector<8x1xf32> to vector<8x32xf32>
    %106 = arith.subf %98, %105 : vector<8x32xf32>
    %107 = arith.mulf %106, %106 : vector<8x32xf32>
    %cst_63 = arith.constant dense<0.000000e+00> : vector<8xf32>
    %108 = vector.multi_reduction <add>, %107, %cst_63 [1] : vector<8x32xf32> to vector<8xf32>
    %109 = vector.shape_cast %108 : vector<8xf32> to vector<8x1xf32>
    %cst_64 = arith.constant 3.200000e+01 : f32
    %110 = vector.broadcast %cst_64 : f32 to vector<8x1xf32>
    %111 = arith.divf %109, %110 : vector<8x1xf32>
    %112 = vector.broadcast %104 : vector<8x1xf32> to vector<8x32xf32>
    %113 = arith.subf %98, %112 : vector<8x32xf32>
    %cst_65 = arith.constant 9.99999974E-6 : f32
    %114 = vector.broadcast %cst_65 : f32 to vector<8x1xf32>
    %115 = arith.addf %111, %114 : vector<8x1xf32>
    %116 = math.rsqrt %115 : vector<8x1xf32>
    %117 = vector.broadcast %116 : vector<8x1xf32> to vector<8x32xf32>
    %118 = arith.mulf %113, %117 : vector<8x32xf32>
    %119 = vector.broadcast %99 : vector<1x32xf32> to vector<8x32xf32>
    %120 = arith.mulf %118, %119 : vector<8x32xf32>
    %121 = vector.broadcast %100 : vector<1x32xf32> to vector<8x32xf32>
    %122 = arith.addf %120, %121 : vector<8x32xf32>
    %c0_66 = arith.constant 0 : index
    %c0_67 = arith.constant 0 : index
    %c0_68 = arith.constant 0 : index
    %123 = vector.load %arg20[%c0_66, %c0_67, %c0_68] : memref<1x8x32xf32, #tpu.memory_space<vmem>>, vector<1x8x32xf32>
    %124 = vector.shape_cast %123 : vector<1x8x32xf32> to vector<8x32xf32>
    %125 = vector.shape_cast %122 : vector<8x32xf32> to vector<1x8x32xf32>
    tpu.vector_store %arg20[%c0_66, %c0_67, %c0_68], %125 {strides = array<i32>} : memref<1x8x32xf32, #tpu.memory_space<vmem>>, vector<1x8x32xf32>,
    return
  }
  func.func @transform_0(%arg0: i32, %arg1: i32) -> (i32, i32, i32, i32) {
    %c0_i32 = arith.constant 0 : i32
    %c0_i32_0 = arith.constant 0 : i32
    %c0_i32_1 = arith.constant 0 : i32
    return %arg0, %c0_i32, %arg1, %c0_i32_0 : i32, i32, i32, i32
  }
  func.func @transform_1(%arg0: i32, %arg1: i32) -> (i32, i32, i32, i32) {
    %c0_i32 = arith.constant 0 : i32
    %c0_i32_0 = arith.constant 0 : i32
    %c0_i32_1 = arith.constant 0 : i32
    %c0_i32_2 = arith.constant 0 : i32
    return %arg0, %c0_i32, %c0_i32_0, %c0_i32_1 : i32, i32, i32, i32
  }
  func.func @transform_2(%arg0: i32, %arg1: i32) -> (i32, i32, i32, i32) {
    %c0_i32 = arith.constant 0 : i32
    %c0_i32_0 = arith.constant 0 : i32
    %c0_i32_1 = arith.constant 0 : i32
    %c0_i32_2 = arith.constant 0 : i32
    return %arg0, %c0_i32, %c0_i32_0, %c0_i32_1 : i32, i32, i32, i32
  }
  func.func @transform_3(%arg0: i32, %arg1: i32) -> (i32, i32, i32) {
    %c0_i32 = arith.constant 0 : i32
    %c0_i32_0 = arith.constant 0 : i32
    return %arg0, %arg1, %c0_i32 : i32, i32, i32
  }
  func.func @transform_4(%arg0: i32, %arg1: i32) -> (i32, i32, i32) {
    %c0_i32 = arith.constant 0 : i32
    %c0_i32_0 = arith.constant 0 : i32
    return %arg0, %arg1, %c0_i32 : i32, i32, i32
  }
  func.func @transform_5(%arg0: i32, %arg1: i32) -> (i32, i32) {
    %c0_i32 = arith.constant 0 : i32
    %c0_i32_0 = arith.constant 0 : i32
    %c0_i32_1 = arith.constant 0 : i32
    return %c0_i32, %c0_i32_0 : i32, i32
  }
  func.func @transform_6(%arg0: i32, %arg1: i32) -> (i32, i32) {
    %c0_i32 = arith.constant 0 : i32
    %c0_i32_0 = arith.constant 0 : i32
    %c0_i32_1 = arith.constant 0 : i32
    return %c0_i32, %c0_i32_0 : i32, i32
  }
  func.func @transform_7(%arg0: i32, %arg1: i32) -> (i32, i32) {
    %c0_i32 = arith.constant 0 : i32
    %c0_i32_0 = arith.constant 0 : i32
    %c0_i32_1 = arith.constant 0 : i32
    return %c0_i32, %c0_i32_0 : i32, i32
  }
  func.func @transform_8(%arg0: i32, %arg1: i32) -> (i32, i32, i32) {
    %c0_i32 = arith.constant 0 : i32
    %c0_i32_0 = arith.constant 0 : i32
    %c0_i32_1 = arith.constant 0 : i32
    %c0_i32_2 = arith.constant 0 : i32
    return %c0_i32, %c0_i32_0, %c0_i32_1 : i32, i32, i32
  }
  func.func @transform_9(%arg0: i32, %arg1: i32) -> (i32, i32) {
    %c0_i32 = arith.constant 0 : i32
    %c0_i32_0 = arith.constant 0 : i32
    %c0_i32_1 = arith.constant 0 : i32
    return %c0_i32, %c0_i32_0 : i32, i32
  }
  func.func @transform_10(%arg0: i32, %arg1: i32) -> (i32, i32) {
    %c0_i32 = arith.constant 0 : i32
    %c0_i32_0 = arith.constant 0 : i32
    %c0_i32_1 = arith.constant 0 : i32
    return %c0_i32, %c0_i32_0 : i32, i32
  }
  func.func @transform_11(%arg0: i32, %arg1: i32) -> (i32, i32) {
    %c0_i32 = arith.constant 0 : i32
    %c0_i32_0 = arith.constant 0 : i32
    %c0_i32_1 = arith.constant 0 : i32
    return %c0_i32, %c0_i32_0 : i32, i32
  }
  func.func @transform_12(%arg0: i32, %arg1: i32) -> (i32, i32) {
    %c0_i32 = arith.constant 0 : i32
    %c0_i32_0 = arith.constant 0 : i32
    %c0_i32_1 = arith.constant 0 : i32
    return %c0_i32, %c0_i32_0 : i32, i32
  }
  func.func @transform_13(%arg0: i32, %arg1: i32) -> (i32, i32) {
    %c0_i32 = arith.constant 0 : i32
    %c0_i32_0 = arith.constant 0 : i32
    %c0_i32_1 = arith.constant 0 : i32
    return %c0_i32, %c0_i32_0 : i32, i32
  }
  func.func @transform_14(%arg0: i32, %arg1: i32) -> (i32, i32) {
    %c0_i32 = arith.constant 0 : i32
    %c0_i32_0 = arith.constant 0 : i32
    %c0_i32_1 = arith.constant 0 : i32
    return %c0_i32, %c0_i32_0 : i32, i32
  }
  func.func @transform_15(%arg0: i32, %arg1: i32) -> (i32, i32) {
    %c0_i32 = arith.constant 0 : i32
    %c0_i32_0 = arith.constant 0 : i32
    %c0_i32_1 = arith.constant 0 : i32
    return %c0_i32, %c0_i32_0 : i32, i32
  }
  func.func @transform_16(%arg0: i32, %arg1: i32) -> (i32, i32) {
    %c0_i32 = arith.constant 0 : i32
    %c0_i32_0 = arith.constant 0 : i32
    %c0_i32_1 = arith.constant 0 : i32
    return %c0_i32, %c0_i32_0 : i32, i32
  }
  func.func @transform_17(%arg0: i32, %arg1: i32) -> (i32, i32) {
    %c0_i32 = arith.constant 0 : i32
    %c0_i32_0 = arith.constant 0 : i32
    %c0_i32_1 = arith.constant 0 : i32
    return %c0_i32, %c0_i32_0 : i32, i32
  }
  func.func @transform_18(%arg0: i32, %arg1: i32) -> (i32, i32, i32) {
    %c0_i32 = arith.constant 0 : i32
    %c0_i32_0 = arith.constant 0 : i32
    return %arg0, %arg1, %c0_i32 : i32, i32, i32
  }
}

</mosaic_0001>

<bundles_post_ra>
// kernel: tpu_custom_call.1
= control target key start
LH: loop header
LB: loop body
LE: loop exit
PB: predicated region body
PF: predicated region fallthrough
CT: control target
= control target key end

     0   :  { %s2561_s0 = inlined_call_operand.vmem [shape: f32[2,4,8,8], index: 0, kind: input, shape index: {}]   ;;  %s2562_s1 = inlined_call_operand.vmem [shape: f32[2,4,8,8], index: 1, kind: input, shape index: {}]   ;;  %s2563_s2 = inlined_call_operand.hbm [shape: f32[2,4,8,8], index: 2, kind: input, shape index: {}]   ;;  %s2564_s3 = inlined_call_operand.hbm [shape: f32[2,8,32], index: 3, kind: input, shape index: {}]   ;;  %s2565_s4 = inlined_call_operand.hbm [shape: f32[2,8,8], index: 4, kind: input, shape index: {}]   ;;  %s2566_s5 = inlined_call_operand.hbm [shape: f32[8,8], index: 5, kind: input, shape index: {}]   ;;  %s2567_s6 = inlined_call_operand.hbm [shape: f32[8,8], index: 6, kind: input, shape index: {}]   ;;  %s2568_s7 = inlined_call_operand.hbm [shape: f32[8,8], index: 7, kind: input, shape index: {}]   ;;  %s2569_s8 = inlined_call_operand.vmem [shape: f32[4,8,32], index: 8, kind: input, shape index: {}]   ;;  %s2570_s9 = inlined_call_operand.vmem [shape: f32[1,32], index: 9, kind: input, shape index: {}]   ;;  %s2571_s10 = inlined_call_operand.vmem [shape: f32[1,32], index: 10, kind: input, shape index: {}]   ;;  %s2572_s11 = inlined_call_operand.vmem [shape: f32[1,32], index: 11, kind: input, shape index: {}]   ;;  %s2573_s12 = inlined_call_operand.hbm [shape: f32[32,128], index: 12, kind: input, shape index: {}]   ;;  %s2574_s13 = inlined_call_operand.vmem [shape: f32[1,128], index: 13, kind: input, shape index: {}]   ;;  %s2575_s14 = inlined_call_operand.vmem [shape: f32[128,32], index: 14, kind: input, shape index: {}]   ;;  %s2576_s15 = inlined_call_operand.vmem [shape: f32[1,32], index: 15, kind: input, shape index: {}]   ;;  %s2577_s16 = inlined_call_operand.vmem [shape: f32[1,32], index: 16, kind: input, shape index: {}]   ;;  %s2578_s17 = inlined_call_operand.vmem [shape: f32[1,32], index: 17, kind: input, shape index: {}]   ;;  %s2579_s18 = inlined_call_operand.hbm [shape: f32[2,8,32], index: 18, kind: output, shape index: {}]  }
   0x1   :  { %2590 = sst [smem:[#allocation27_spill]] %s2561_s0 }
   0x2   :  { %2591 = sst [smem:[#allocation28_spill]] %s2562_s1 }
   0x3   :  { %2592 = sst [smem:[#allocation29_spill]] %s2563_s2 }
   0x4   :  { %2593 = sst [smem:[#allocation30_spill]] %s2564_s3 }
   0x5   :  { %2594 = sst [smem:[#allocation31_spill]] %s2565_s4 }
   0x6   :  { %2595 = sst [smem:[#allocation32_spill]] %s2566_s5 }
   0x7   :  { %2596 = sst [smem:[#allocation33_spill]] %s2567_s6 }
   0x8   :  { %2597 = sst [smem:[#allocation34_spill]] %s2568_s7 }
   0x9   :  { %2598 = sst [smem:[#allocation35_spill]] %s2572_s11 }
   0xa   :  { %2599 = sst [smem:[#allocation36_spill]] %s2573_s12 }
   0xb   :  { %2600 = sst [smem:[#allocation37_spill]] %s2574_s13 }
   0xc   :  { %2601 = sst [smem:[#allocation38_spill]] %s2576_s15 }
   0xd   :  { %2602 = sst [smem:[#allocation39_spill]] %s2577_s16 }
   0xe   :  { %2603 = sst [smem:[#allocation40_spill]] %s2578_s17 }
   0xf   :  { %2604 = sst [smem:[#allocation41_spill]] %s2579_s18 }
  0x10   :  { %23 = vsyncpa [#allocation3], 0 }
  0x11   :  { %25 = vsyncpa [#allocation3 + $0x1], 0 }
  0x12   :  { %26 = vsyncpa [#allocation6], 0 }
  0x13   :  { %28 = vsyncpa [#allocation6 + $0x1], 0 }
  0x14   :  { %29 = vsyncpa [#allocation9], 0 }
  0x15   :  { %30 = vsyncpa [#allocation12], 0 }
  0x16   :  { %31 = vsyncpa [#allocation4], 0 }
  0x17   :  { %33 = vsyncpa [#allocation4 + $0x1], 0  ;;  %s2192_s27 = smov 0   ;;  %s2194_s28 = smov 0  }
  0x18   :  { %s2196_s29 = smov 0   ;;  %s2198_s30 = smov 0  }
  0x19   :  { %s2200_s0 = smov 0   ;;  %s2202_s19 = smov 0  }
  0x1a LB: > { %2605 = sst [smem:[#allocation20_spill]] %s2068_s27  ;;  %s2223_s1 = sadd.s32 4294967295, %s2088_s19   ;;  %s2088_s19 = sphi %s2202_s19, %s39_s19   ;;  %s2084_s0 = sphi %s2200_s0, %s2647_s0   ;;  %s2080_s30 = sphi %s2198_s30, %s2646_s30   ;;  %s2076_s29 = sphi %s2196_s29, %s2642_s29   ;;  %s2072_s28 = sphi %s2194_s28, %s2645_s28   ;;  %s2068_s27 = sphi %s2192_s27, %s2644_s27  }
  0x1b   : > { %2606 = sst [smem:[#allocation21_spill]] %s2076_s29  ;;  %p1587_p0 = scmp.ge.s32.totalorder %s2088_s19, 1 }
  0x1c   : > { %2607 = sst [smem:[#allocation22_spill]] %s2088_s19  ;;  %p126_p1 = scmp.eq.s32.totalorder %s2223_s1, 0 }
  0x1d   : > { %p493_p2 = scmp.lt.s32.totalorder %s2088_s19, 3  ;;  %s2608_s5 = sld [smem:[#allocation32_spill]] }
  0x1e   : > { %s2090_s23 = smov [#allocation8]   ;;  %s2610_s7 = sld [smem:[#allocation34_spill]] }
  0x1f   : > { %p2231_p3 = pnand %p1587_p0, %p493_p2  ;;  %s507_s24 = sshll.u32 %s2090_s23, 4  ;;  %s508_s24 = int_to_ptr.vmem [resolvable:$true] %s507_s24 }
  0x20   : > { %s1586_s23 = sadd.s32 4294967294, %s2088_s19   ;;  %s51_s25 = sadd.s32 1, %s2084_s0 }
  0x21   : > { %p1663_p5 = pneg %p2231_p3  ;;  %p53_p7 = scmp.ge.s32.totalorder %s51_s25, 2 }
  0x22   : > { %s112_s26 = sadd.s32 1, %s2076_s29  ;;  %p119_p8 = scmp.ne.s32.totalorder %s2076_s29, %s2072_s28 }
  0x23   : > { %s505_s22 = sshll.u32 %s2608_s5, 4  ;;  %p2243_p6 = pnand %p1663_p5, %p126_p1  ;;  %s506_s22 = int_to_ptr.hbm [resolvable:$true] %s505_s22 }
  0x24   : > { %s529_s20 = sshll.u32 %s2610_s7, 4  ;;  %s2091_s5 = smov [#allocation11]   ;;  %s530_s20 = int_to_ptr.hbm [resolvable:$true] %s529_s20 }
  0x25   : > { %s531_s17 = sshll.u32 %s2091_s5, 4  ;;  %p120_p9 = scmp.eq.s32.totalorder %s2088_s19, 0  ;;  %s532_s17 = int_to_ptr.vmem [resolvable:$true] %s531_s17 }
  0x26   : > { %1666 = dma.hbm_to_vmem [thread:$0]  (!%p2243_p6), %s506_s22, 128, %s508_s24, [#allocation9]  }
  0x27   : > { %1672 = dma.hbm_to_vmem [thread:$0]  (!%p2243_p6), %s530_s20, 128, %s532_s17, [#allocation12]  }
  0x28   : > { %s2649_s25 = smov (%p53_p7, %s51_s25), 0  ;;  %p2259_p10 = por %p120_p9, %p119_p8 }
  0x29   : > { %2612 = sst [smem:[#allocation23_spill]] %s2649_s25  ;;  %p125_p11 = scmp.ne.s32.totalorder %s2072_s28, %s2068_s27 }
  0x2a   : > { %s109_s17 = ssub.s32 %s2084_s0, %s2649_s25  ;;  %p480_p12 = scmp.eq.s32.totalorder %s2223_s1, 1 }
  0x2b   : > { %p110_p13 = scmp.eq.s32.totalorder %s109_s17, 0  ;;  %p2270_p0 = por %p126_p1, %p125_p11 }
  0x2c   : > { %p2274_p2 = por %p480_p12, %p119_p8  ;;  %p486_p5 = scmp.eq.s32.totalorder %s1586_s23, 1 }
  0x2d   : > { %s2279_s20 = scalar_select %p110_p13, %s2076_s29, %s112_s26  }
  0x2e   : > { %s2615_s24 = scalar_select %p2274_p2, 1, 0 }
  0x2f   : > { %2617 = sst [smem:[#allocation25_spill]] %s2279_s20  ;;  %p2281_p7 = por %p486_p5, %p125_p11 }
  0x30   : > { %2616 = sst [smem:[#allocation24_spill]] %s2615_s24  ;;  %p1694_p9 = scmp.lt.s32.totalorder %s2088_s19, 2 }
  0x31   : > { %s2618_s7 = scalar_select %p2281_p7, 1, 0 }
  0x32   : > { %s2287_s25 = sand.u32 1, %s2076_s29   ;;  %s624_s17 = sand.u32 1, %s2088_s19  }
  0x33   : > { %2619 = sst [smem:[#allocation26_spill]] %s2618_s7  ;;  %p2292_p4 = pnand %p1694_p9, %p2259_p10 }
  0x34   : > { %s2589_s24 = sshll.u32 %s2287_s25, 3  ;;  %s1597_s23 = sshll.u32 %s2084_s0, 3 }
  0x35   : > { %s2621_s3 = sld [smem:[#allocation30_spill]]  ;;  %s628_s7 = scalar_lea.vmem [#allocation5], %s2589_s24 }
  0x36   : > { %s637_s29 = sshll.u32 %s628_s7, 4  ;;  %s2303_s19 = scalar_lea.sflag [#allocation6], %s624_s17  ;;  %s638_s29 = int_to_ptr.vmem [resolvable:$true] %s637_s29 }
  0x37   : > { %s2622_s4 = sld [smem:[#allocation31_spill]]  ;;  %s2093_s15 = smov [#allocation13]  }
  0x38   : > { %s2623_s6 = sld [smem:[#allocation33_spill]]  ;;  %s1593_s5 = sshll.u32 %s2287_s25, 5 }
  0x39   : > { %s2624_s12 = sld [smem:[#allocation36_spill]] }
  0x3b   : > { %s633_s18 = scalar_lea.hbm %s2621_s3, %s1597_s23  ;;  %s1636_s3 = sshll.u32 %s2084_s0, 5 }
  0x3c   : > { %s635_s16 = sshll.u32 %s633_s18, 4  ;;  %s2092_s18 = smov [#allocation10]   ;;  %s636_s16 = int_to_ptr.hbm [resolvable:$true] %s635_s16 }
  0x3d   : > { %1682 = dma.hbm_to_vmem [thread:$0]  (!%p2292_p4), %s636_s16, 128, %s638_s29, %s2303_s19  }
  0x3e   : > { %s2311_s13 = scalar_lea.hbm %s2622_s4, %s1597_s23  ;;  %s517_s7 = sshll.u32 %s2623_s6, 4  ;;  %s518_s7 = int_to_ptr.hbm [resolvable:$true] %s517_s7 }
  0x3f   : > { %s519_s24 = sshll.u32 %s2092_s18, 4  ;;  %s552_s11 = sshll.u32 %s2624_s12, 4  ;;  %s520_s24 = int_to_ptr.vmem [resolvable:$true] %s519_s24  ;;  %s553_s11 = int_to_ptr.hbm [resolvable:$true] %s552_s11 }
  0x40   : > { %1669 = dma.hbm_to_vmem [thread:$0]  (!%p2243_p6), %s518_s7, 128, %s520_s24, [#allocation9]  }
  0x41   : > { %s554_s16 = sshll.u32 %s2093_s15, 4  ;;  %s2094_s29 = smov 128   ;;  %s555_s16 = int_to_ptr.vmem [resolvable:$true] %s554_s16 }
  0x42   : > { %s2095_s23 = smov 8   ;;  %s2625_s18 = sld [smem:[#allocation29_spill]] }
  0x43   : > { %1675 = dma.hbm_to_vmem [thread:$0]  (!%p2243_p6), %s553_s11, 512, %s555_s16, [#allocation12], %s2094_s29, %s2094_s29, %s2095_s23  }
  0x44   : > { %s606_s24 = scalar_lea.vmem [#allocation2], %s1593_s5  ;;  %s603_s15 = scalar_lea.sflag [#allocation3], %s2287_s25 }
  0x45   : > { %s614_s7 = sshll.u32 %s606_s24, 4  ;;  %s655_s6 = sshll.u32 %s2311_s13, 4  ;;  %s615_s7 = int_to_ptr.vmem [resolvable:$true] %s614_s7  ;;  %s656_s6 = int_to_ptr.hbm [resolvable:$true] %s655_s6 }
  0x46   : > { %s2626_s12 = sshll.u32 %s2287_s25, 3  ;;  %s2340_s16 = sand.u32 (!%p2231_p3), 1, %s2072_s28  }
  0x47   : > { %s648_s21 = scalar_lea.vmem [#allocation7], %s2626_s12  ;;  %666 = sbr.rel (%p2231_p3) target bundleno = 1721 (0x6b9), region = 92 }
  0x48   : > { %s611_s17 = scalar_lea.hbm %s2625_s18, %s1636_s3  ;;  %s657_s11 = sshll.u32 %s648_s21, 4  ;;  %s658_s11 = int_to_ptr.vmem [resolvable:$true] %s657_s11 }
  0x49   : > { %s612_s4 = sshll.u32 %s611_s17, 4  ;;  %s1601_s5 = sshll.u32 (!%p2231_p3), %s2340_s16, 5  ;;  %s613_s4 = int_to_ptr.hbm [resolvable:$true] %s612_s4 }
  0x4a   : > { %1679 = dma.hbm_to_vmem [thread:$0]  (!%p2292_p4), %s613_s4, 512, %s615_s7, %s603_s15, %s2094_s29, %s2094_s29, %s2095_s23  }
  0x4b   : > { %1685 = dma.hbm_to_vmem [thread:$0]  (!%p2292_p4), %s656_s6, 128, %s658_s11, %s2303_s19  }
  0x4c   : > { %s669_s3 = scalar_lea.sflag [#allocation3], %s2340_s16  ;;  %s2344_s4 = scalar_lea.vmem [#allocation2], %s1601_s5 }
  0x4d   : > { %2047 = dma.done.wait (%p2270_p0), %s669_s3, 512  }
  0x4e   : > { %2049 = vsyncadd (%p2270_p0), %s669_s3, 4294966784  ;;  %s678_s6 = sand.u32 1, %s2223_s1   ;;  %s2352_s12 = sshll.u32 %s2340_s16, 3 }
  0x4f   : > { %s679_s13 = scalar_lea.sflag [#allocation6], %s678_s6  ;;  %s682_s27 = scalar_lea.vmem [#allocation5], %s2352_s12 }
  0x50   : > { %2051 = dma.done.wait (%p2270_p0), %s679_s13, 256  }
  0x51   : > { %2053 = vsyncadd (%p2270_p0), %s679_s13, 4294967040  ;;  %s692_s19 = scalar_lea.vmem [#allocation7], %s2352_s12 }
  0x52   : > { %2055 = dma.done.wait (%p126_p1), [#allocation9], 256  }
  0x53   : > { %2057 = vsyncadd (%p126_p1), [#allocation9], 4294967040 }
  0x54   : > { %2059 = dma.done.wait (%p126_p1), [#allocation12], 640  }
  0x55   : > { %2061 = vsyncadd (%p126_p1), [#allocation12], 4294966656  ;;  %p789_p3 = scmp.lt.s32.totalorder %s2080_s30, 1  ;;  %s2627_s23 = sld [smem:[#allocation28_spill]]  ;;  %v817_v0 = vld [vmem:[#allocation10] sm:$0xff]  ;;  %vm830_vm0 = vcmask 1043456  }
  0x56   : > { %s2628_s17 = sld [smem:[#allocation27_spill]]  ;;  %v818_v3 = vpack.c.bf16 %v817_v0, %v817_v0  ;;  %v815_v4 = vld [vmem:[#allocation8] sm:$0xff]  ;;  %vm823_vm1 = vcmask 64512   ;;  %v925_v42 = vld [vmem:[%s692_s19] sm:$0xff]  ;;  %v812_v46 = vld [vmem:[%s2344_s4 + $0x8] sm:$0xff]  ;;  %vm1218_vm2 = vcmask 261120  }
  0x57   : > { %s790_s2 = scalar_select %p789_p3, %s2080_s30, 1  ;;  %v816_v7 = vpack.c.bf16 %v815_v4, %v815_v4  ;;  %v819_v44 = vld [vmem:[#allocation11] sm:$0xff]  ;;  %v811_v45 = vld [vmem:[%s2344_s4] sm:$0xff] }
  0x58   : > { %v862_v8 = vsel %vm830_vm0, %v818_v3, 0  ;;  %v820_v48 = vpack.c.bf16 %v819_v44, %v819_v44  ;;  %v883_v51 = vpack.c.bf16 %v812_v46, %v811_v45  ;;  %s2630_s5 = sld [smem:[#allocation37_spill]]  ;;  %s1633_s13 = sshll.u32 %s2080_s30, 3 }
  0x59   : > { %s1637_s25 = sshll.u32 %s790_s2, 5  ;;  %871 = vmatpush.bf16.msra.mxu1 %v862_v8  ;;  %v832_v10 = vsel %vm830_vm0, %v816_v7, 0  ;;  %s2631_s6 = sld [smem:[#allocation38_spill]] }
  0x5a   : > { %841 = vmatpush.bf16.msra.mxu0 %v832_v10  ;;  %v892_v50 = vsel %vm830_vm0, %v820_v48, 0  ;;  %s2632_s2 = sld [smem:[#allocation39_spill]]  ;;  %s788_s30 = scalar_lea.vmem [#allocation14], %s2352_s12 }
  0x5b   : > { %s801_s20 = scalar_lea.vmem %s2627_s23, %s1637_s25  ;;  %901 = vmatpush.bf16.msra.mxu2 %v892_v50  ;;  %s2629_s23 = sld [smem:[#allocation35_spill]] }
  0x5c   : > { %s796_s24 = scalar_lea.vmem %s2628_s17, %s1637_s25  ;;  %v807_v1 = vld [vmem:[%s801_s20] sm:$0xff]  ;;  %v808_v2 = vld [vmem:[%s801_s20 + $0x8] sm:$0xff]  ;;  %v809_v12 = vld [vmem:[%s801_s20 + $0x10] sm:$0xff]  ;;  %s2633_s29 = sld [smem:[#allocation41_spill]] }
  0x5d   : > { %v803_v5 = vld [vmem:[%s796_s24] sm:$0xff]  ;;  %v804_v6 = vld [vmem:[%s796_s24 + $0x8] sm:$0xff]  ;;  %v853_v9 = vpack.c.bf16 %v808_v2, %v807_v1  ;;  %v810_v13 = vld [vmem:[%s801_s20 + $0x18] sm:$0xff]  ;;  %s1390_s1 = sshll.u32 %s788_s30, 4  ;;  %s1377_s15 = scalar_lea.sflag [#allocation4], %s2340_s16  ;;  %s1391_s1 = int_to_ptr.vmem [resolvable:$true] %s1390_s1 }
  0x5e   : > { %v821_v11 = vpack.c.bf16 %v804_v6, %v803_v5  ;;  %v805_v14 = vld [vmem:[%s796_s24 + $0x10] sm:$0xff]  ;;  %v806_v15 = vld [vmem:[%s796_s24 + $0x18] sm:$0xff]  ;;  %v854_v16 = vpack.c.bf16 %v810_v13, %v809_v12  ;;  %1617 = vmatmul.msk.bf16.vlgmr.msra.gmra.mxu2 %vm823_vm1, %v883_v51  ;;  %s2636_s24 = sld [smem:[#allocation40_spill]] }
  0x5f   : > { %1615 = vmatmul.msk.bf16.vlgmr.msra.gmra.mxu1 %vm823_vm1, %v853_v9  ;;  %v822_v17 = vpack.c.bf16 %v806_v15, %v805_v14  ;;  %v813_v1 = vld [vmem:[%s2344_s4 + $0x10] sm:$0xff]  ;;  %v814_v2 = vld [vmem:[%s2344_s4 + $0x18] sm:$0xff] }
  0x60   : > { %1613 = vmatmul.msk.bf16.vlgmr.msra.gmra.mxu0 %vm823_vm1, %v821_v11  ;;  %v884_v3 = vpack.c.bf16 %v814_v2, %v813_v1 }
  0x62   : > { %s1388_s20 = scalar_lea.hbm %s2633_s29, %s1633_s13 }
  0x63   : > { %s1392_s7 = sshll.u32 %s1388_s20, 4  ;;  %s1393_s7 = int_to_ptr.hbm [resolvable:$true] %s1392_s7 }
  0x64   : > { %s2008_s21 = sshra.s32 %s1393_s7, 4  ;;  %s2009_s21 = int_to_ptr.hbm [resolvable:$true] %s2008_s21 }
  0x65   : > { %s2010_s11 = scalar_lea.hbm %s2009_s21, 8 }
  0x66   : > { %p2011_p1 = scmp.ne.s32.totalorder %s2009_s21, %s2010_s11 }
  0x68   : > { %p2012_p4 = pnand %p2011_p1, %p2274_p2 }
  0x6a   : > { %p2013_p6 = pneg %p2012_p4 }
  0x6e   : > { %1618 = vmatmul.msk.bf16.gmra.mxu2 %vm823_vm1, %v884_v3 }
  0x6f   : > { %1616 = vmatmul.msk.bf16.gmra.mxu1 %vm823_vm1, %v854_v16 }
  0x70   : > { %1614 = vmatmul.msk.bf16.gmra.mxu0 %vm823_vm1, %v822_v17 }
  0xdc   : > { %v873_v18 = vpop.f32.mrf.mxu1 }
  0xdd   : > { %v921_v19 = vpack.c.bf16 %v873_v18, %v873_v18  ;;  %v843_v20 = vpop.f32.mrf.mxu0 }
  0xde   : > { %v913_v22 = vmul.f32 0.17677669, %v843_v20 }
  0xdf   : > { %v930_v21 = vsel %vm823_vm1, %v921_v19, 0 }
  0xe0   : > { %939 = vmatpush.bf16.xpose.msrb.mxu0 %v930_v21  ;;  %v917_v23 = vpack.c.bf16 %v913_v22, %v913_v22 }
  0xe4   : > { %v875_v24 = vpop.f32.mrf.mxu1 }
  0xe5   : > { %v922_v25 = vpack.c.bf16 %v875_v24, %v875_v24  ;;  %v845_v26 = vpop.f32.mrf.mxu0  ;;  %v903_v24 = vpop.f32.mrf.mxu2 }
  0xe6   : > { %v914_v28 = vmul.f32 0.17677669, %v845_v26 }
  0xe7   : > { %1619 = vmatmul.msk.bf16.vlgmr.msrb.gmra.mxu0 %vm823_vm1, %v917_v23  ;;  %v949_v27 = vsel %vm823_vm1, %v922_v25, 0  ;;  %v1050_v25 = vpack.c.bf16 %v903_v24, %v903_v24 }
  0xe8   : > { %958 = vmatpush.bf16.xpose.msra.mxu3 %v949_v27  ;;  %v918_v30 = vpack.c.bf16 %v914_v28, %v914_v28 }
  0xe9   : > { %v1058_v26 = vsel %vm830_vm0, %v1050_v25, 0 }
  0xea   : > { %1067 = vmatpush.bf16.msrb.mxu2 %v1058_v26 }
  0xec   : > { %v878_v29 = vpop.f32.mrf.mxu1 }
  0xed   : > { %v923_v31 = vpack.c.bf16 %v878_v29, %v878_v29  ;;  %v848_v32 = vpop.f32.mrf.mxu0  ;;  %v905_v27 = vpop.f32.mrf.mxu2 }
  0xee   : > { %v915_v34 = vmul.f32 0.17677669, %v848_v32  ;;  %v1051_v28 = vpack.c.bf16 %v905_v27, %v905_v27  ;;  %v1231_v27 = vld [vmem:[%s682_s27] sm:$0xff] }
  0xef   : > { %v968_v33 = vsel %vm823_vm1, %v923_v31, 0  ;;  %1620 = vmatmul.msk.bf16.vlgmr.msra.gmra.mxu3 %vm823_vm1, %v918_v30 }
  0xf0   : > { %977 = vmatpush.bf16.xpose.msra.mxu0 %v968_v33  ;;  %v919_v35 = vpack.c.bf16 %v915_v34, %v915_v34  ;;  %v1077_v29 = vsel %vm830_vm0, %v1051_v28, 0 }
  0xf1   : > { %1086 = vmatpush.bf16.msrb.mxu3 %v1077_v29 }
  0xf4   : > { %v880_v36 = vpop.f32.mrf.mxu1 }
  0xf5   : > { %v924_v37 = vpack.c.bf16 %v880_v36, %v880_v36  ;;  %v850_v38 = vpop.f32.mrf.mxu0  ;;  %v908_v30 = vpop.f32.mrf.mxu2 }
  0xf6   : > { %v916_v40 = vmul.f32 0.17677669, %v850_v38  ;;  %v1052_v31 = vpack.c.bf16 %v908_v30, %v908_v30 }
  0xf7   : > { %1621 = vmatmul.msk.bf16.vlgmr.msra.gmra.mxu0 %vm823_vm1, %v919_v35  ;;  %v987_v39 = vsel %vm823_vm1, %v924_v37, 0 }
  0xf8   : > { %996 = vmatpush.bf16.xpose.msrb.mxu1 %v987_v39  ;;  %v920_v41 = vpack.c.bf16 %v916_v40, %v916_v40  ;;  %v1096_v32 = vsel %vm830_vm0, %v1052_v31, 0 }
  0xf9   : > { %1105 = vmatpush.bf16.msrb.mxu0 %v1096_v32  ;;  %v2096_v32 = vmov 32.0  }
  0xfd   : > { %v910_v33 = vpop.f32.mrf.mxu2 }
  0xfe   : > { %v1053_v34 = vpack.c.bf16 %v910_v33, %v910_v33 }
  0xff   : > { %1622 = vmatmul.msk.bf16.vlgmr.msrb.gmra.mxu1 %vm823_vm1, %v920_v41 }
 0x100   : > { %v1115_v35 = vsel %vm830_vm0, %v1053_v34, 0 }
 0x101   : > { %1124 = vmatpush.bf16.msra.mxu1 %v1115_v35 }
 0x164   : > { %v941_v43 = vpop.f32.mrf.mxu0 }
 0x165   : > { %v942_v47 = vadd.f32 %v941_v43, %v925_v42 }
 0x167   : > { %v1002_v49 = vsel %vm823_vm1, %v942_v47, -inf }
 0x168   : > { %1003 = vmax.xlane.f32.xlu0 %v1002_v49 }
 0x16c   : > { %v943_v52 = vpop.f32.mrf.mxu0 }
 0x16d   : > { %v1134_v52 = vld [vmem:[%s2569_s8] sm:$0xff] }
 0x172   : > { %v960_v53 = vpop.f32.mrf.mxu3 }
 0x173   : > { %v961_v54 = vadd.f32 %v960_v53, %v925_v42  ;;  %v1138_v53 = vpack.c.bf16 %v1134_v52, %v1134_v52  ;;  %v1313_v52 = vld [vmem:[%s2575_s14 + $0x60] sm:$0xff] }
 0x174   : > { %v979_v55 = vpop.f32.mrf.mxu0 }
 0x175   : > { %v980_v56 = vadd.f32 %v979_v55, %v925_v42  ;;  %v1005_v57 = vsel %vm823_vm1, %v961_v54, -inf  ;;  %v1136_v55 = vld [vmem:[%s2569_s8 + $0x10] sm:$0xff] }
 0x176   : > { %1006 = vmax.xlane.f32.xlu0 %v1005_v57 }
 0x177   : > { %v1008_v58 = vsel %vm823_vm1, %v980_v56, -inf }
 0x178   : > { %1009 = vmax.xlane.f32.xlu1 %v1008_v58  ;;  %v1135_v58 = vld [vmem:[%s2569_s8 + $0x8] sm:$0xff] }
 0x17a   : > { %v962_v59 = vpop.f32.mrf.mxu3 }
 0x17b   : > { %v1139_v59 = vpack.c.bf16 %v1135_v58, %v1135_v58 }
 0x17c   : > { %v998_v60 = vpop.f32.mrf.mxu1  ;;  %v981_v61 = vpop.f32.mrf.mxu0 }
 0x17d   : > { %v999_v62 = vadd.f32 %v998_v60, %v925_v42  ;;  %v1165_v60 = vsel %vm830_vm0, %v1139_v59, 0  ;;  %v1137_v61 = vld [vmem:[%s2569_s8 + $0x18] sm:$0xff]  ;;  %v1311_v59 = vld [vmem:[%s2575_s14 + $0x50] sm:$0xff] }
 0x17e   : > { %1174 = vmatpush.bf16.msra.mxu3 %v1165_v60  ;;  %v1312_v60 = vld [vmem:[%s2575_s14 + $0x58] sm:$0xff] }
 0x17f   : > { %v1011_v63 = vsel %vm823_vm1, %v999_v62, -inf }
 0x180   : > { %1012 = vmax.xlane.f32.xlu1 %v1011_v63 }
 0x184   : > { %v1000_v0 = vpop.f32.mrf.mxu1 }
 0x1db   : > { %v1004_v4 = vpop.xlane.xlu0 %1003 }
 0x1dc   : > { %v1014_v5 = vsub.f32 %v942_v47, %v1004_v4 }
 0x1de   : > { %v1018_v6 = vmul.f32 1.442695, %v1014_v5 }
 0x1e0   : > { %1762 = vpow2.f32 %v1018_v6 }
 0x1e6   : > { %v1763_v7 = vpop.eup %1762 }
 0x1e7   : > { %v1026_v8 = vsel %vm823_vm1, %v1763_v7, 0.0 }
 0x1e8   : > { %1027 = vadd.xlane.f32.xlu2 %v1026_v8 }
 0x1e9   : > { %v1007_v9 = vpop.xlane.xlu0 %1006 }
 0x1ea   : > { %v1015_v10 = vsub.f32 %v961_v54, %v1007_v9  ;;  %v1146_v54 = vsel %vm830_vm0, %v1138_v53, 0 }
 0x1eb   : > { %v1010_v11 = vpop.xlane.xlu1 %1009  ;;  %1155 = vmatpush.bf16.msra.mxu2 %v1146_v54 }
 0x1ec   : > { %v1020_v12 = vmul.f32 1.442695, %v1015_v10  ;;  %v1016_v13 = vsub.f32 %v980_v56, %v1010_v11  ;;  %v1140_v56 = vpack.c.bf16 %v1136_v55, %v1136_v55  ;;  %v1314_v55 = vld [vmem:[%s2575_s14 + $0x68] sm:$0xff] }
 0x1ee   : > { %1764 = vpow2.f32 %v1020_v12  ;;  %v1022_v14 = vmul.f32 1.442695, %v1016_v13  ;;  %v1184_v57 = vsel %vm830_vm0, %v1140_v56, 0 }
 0x1ef   : > { %1193 = vmatpush.bf16.msra.mxu0 %v1184_v57  ;;  %v1323_v57 = vpack.c.bf16 %v1314_v55, %v1313_v52  ;;  %v1761_v55 = vld [vmem:[%s2636_s24] ss:$0 sm:$0xff] }
 0x1f0   : > { %1766 = vpow2.f32 %v1022_v14 }
 0x1f3   : > { %v1013_v15 = vpop.xlane.xlu1 %1012 }
 0x1f4   : > { %v1765_v16 = vpop.eup %1764  ;;  %v1017_v17 = vsub.f32 %v999_v62, %v1013_v15  ;;  %v1141_v62 = vpack.c.bf16 %v1137_v61, %v1137_v61  ;;  %v1322_v61 = vpack.c.bf16 %v1312_v60, %v1311_v59 }
 0x1f5   : > { %v1029_v18 = vsel %vm823_vm1, %v1765_v16, 0.0 }
 0x1f6   : > { %v1767_v19 = vpop.eup %1766  ;;  %v1024_v20 = vmul.f32 1.442695, %v1017_v17  ;;  %1030 = vadd.xlane.f32.xlu2 %v1029_v18  ;;  %v1203_v63 = vsel %vm830_vm0, %v1141_v62, 0  ;;  %v1309_v62 = vld [vmem:[%s2575_s14 + $0x40] sm:$0xff] }
 0x1f7   : > { %v1032_v21 = vsel %vm823_vm1, %v1767_v19, 0.0  ;;  %1212 = vmatpush.bf16.msrb.mxu1 %v1203_v63  ;;  %v1310_v63 = vld [vmem:[%s2575_s14 + $0x48] sm:$0xff] }
 0x1f8   : > { %1768 = vpow2.f32 %v1024_v20  ;;  %1033 = vadd.xlane.f32.xlu0 %v1032_v21 }
 0x1fe   : > { %v1769_v22 = vpop.eup %1768 }
 0x1ff   : > { %v1035_v23 = vsel %vm823_vm1, %v1769_v22, 0.0 }
 0x200   : > { %1036 = vadd.xlane.f32.xlu1 %v1035_v23  ;;  %v1755_v23 = vld [vmem:[%s2570_s9] ss:$0 sm:$0xff] }
 0x25b   : > { %v1028_v36 = vpop.xlane.xlu2 %1027 }
 0x25c   : > { %1770 = vrcp.f32 %v1028_v36 }
 0x262   : > { %v1771_v37 = vpop.eup %1770 }
 0x263   : > { %v1042_v38 = vmul.f32 %v1771_v37, %v1763_v7 }
 0x265   : > { %v1046_v39 = vpack.c.bf16 %v1042_v38, %v1042_v38 }
 0x267   : > { %1623 = vmatmul.msk.bf16.vlgmr.msrb.gmra.mxu2 %vm823_vm1, %v1046_v39 }
 0x269   : > { %v1031_v40 = vpop.xlane.xlu2 %1030 }
 0x26a   : > { %1772 = vrcp.f32 %v1031_v40 }
 0x26b   : > { %v1034_v41 = vpop.xlane.xlu0 %1033 }
 0x26c   : > { %1774 = vrcp.f32 %v1034_v41 }
 0x270   : > { %v1773_v42 = vpop.eup %1772 }
 0x271   : > { %v1043_v43 = vmul.f32 %v1773_v42, %v1765_v16 }
 0x272   : > { %v1775_v44 = vpop.eup %1774 }
 0x273   : > { %v1044_v45 = vmul.f32 %v1775_v44, %v1767_v19  ;;  %v1037_v46 = vpop.xlane.xlu1 %1036  ;;  %v1047_v47 = vpack.c.bf16 %v1043_v43, %v1043_v43  ;;  %v1275_v44 = vld [vmem:[#allocation13 + $0x10] sm:$0xff] }
 0x274   : > { %1776 = vrcp.f32 %v1037_v46 }
 0x275   : > { %v1048_v48 = vpack.c.bf16 %v1044_v45, %v1044_v45  ;;  %1624 = vmatmul.msk.bf16.vlgmr.msrb.gmra.mxu3 %vm823_vm1, %v1047_v47  ;;  %1778 = vrcp.f32 %v2096_v32  ;;  %v1276_v45 = vld [vmem:[#allocation13 + $0x18] sm:$0xff]  ;;  %v1273_v47 = vld [vmem:[#allocation13] sm:$0xff]  ;;  %v1759_v32 = vld [vmem:[%s2631_s6] ss:$0 sm:$0xff] }
 0x276   : > { %v1278_v46 = vpack.c.bf16 %v1276_v45, %v1275_v44 }
 0x277   : > { %1625 = vmatmul.msk.bf16.vlgmr.msrb.gmra.mxu0 %vm823_vm1, %v1048_v48  ;;  %v1274_v48 = vld [vmem:[#allocation13 + $0x8] sm:$0xff] }
 0x278   : > { %1292 = vmatpush.bf16.msrb.mxu2 %v1278_v46 }
 0x27a   : > { %v1777_v49 = vpop.eup %1776 }
 0x27b   : > { %v1045_v50 = vmul.f32 %v1777_v49, %v1769_v22  ;;  %v1779_v33 = vpop.eup %1778  ;;  %v1277_v49 = vpack.c.bf16 %v1274_v48, %v1273_v47 }
 0x27c   : > { %v1239_v34 = vmul.f32 32.0, %v1779_v33  ;;  %vm1243_vm3 = vweird.f32 %v1779_v33 }
 0x27d   : > { %v1049_v51 = vpack.c.bf16 %v1045_v50, %v1045_v50  ;;  %1293 = vmatpush.bf16.msrb.mxu2 %v1277_v49  ;;  %v1315_v50 = vld [vmem:[%s2575_s14 + $0x70] sm:$0xff] }
 0x27e   : > { %v1240_v35 = vsub.f32 1.0, %v1239_v34 }
 0x27f   : > { %1626 = vmatmul.msk.bf16.vlgmr.msra.gmra.mxu1 %vm823_vm1, %v1049_v51  ;;  %v1316_v51 = vld [vmem:[%s2575_s14 + $0x78] sm:$0xff] }
 0x280   : > { %v1241_v36 = vmul.f32 %v1779_v33, %v1240_v35  ;;  %v1324_v54 = vpack.c.bf16 %v1316_v51, %v1315_v50 }
 0x282   : > { %v1242_v37 = vadd.f32 %v1779_v33, %v1241_v36  ;;  %1329 = vmatpush.bf16.msrb.mxu3 %v1324_v54 }
 0x284   : > { %v2445_v38 = vsel %vm1243_vm3, %v1779_v33, %v1242_v37 }
 0x286   : > { %1330 = vmatpush.bf16.msrb.mxu3 %v1323_v57 }
 0x28a   : > { %1331 = vmatpush.bf16.msrb.mxu3 %v1322_v61 }
 0x2ea   : > { %v1069_v0 = vpop.f32.mrf.mxu2 }
 0x2eb   : > { %v1130_v1 = vpack.c.bf16 %v1069_v0, %v1069_v0  ;;  %v1321_v0 = vpack.c.bf16 %v1310_v63, %v1309_v62 }
 0x2ed   : > { %1627 = vmatmul.msk.bf16.vlgmr.msra.gmra.mxu2 %vm823_vm1, %v1130_v1  ;;  %1332 = vmatpush.bf16.msrb.mxu3 %v1321_v0 }
 0x2f2   : > { %v1071_v2 = vpop.f32.mrf.mxu2 }
 0x2f3   : > { %v1307_v2 = vld [vmem:[%s2575_s14 + $0x30] sm:$0xff] }
 0x2f4   : > { %v1107_v3 = vpop.f32.mrf.mxu0 }
 0x2f5   : > { %v1132_v4 = vpack.c.bf16 %v1107_v3, %v1107_v3  ;;  %v1308_v3 = vld [vmem:[%s2575_s14 + $0x38] sm:$0xff] }
 0x2f7   : > { %1629 = vmatmul.msk.bf16.vlgmr.msra.gmra.mxu0 %vm823_vm1, %v1132_v4 }
 0x2f8   : > { %v1088_v5 = vpop.f32.mrf.mxu3 }
 0x2f9   : > { %v1131_v6 = vpack.c.bf16 %v1088_v5, %v1088_v5 }
 0x2fb   : > { %1628 = vmatmul.msk.bf16.vlgmr.msra.gmra.mxu3 %vm823_vm1, %v1131_v6  ;;  %v1320_v6 = vpack.c.bf16 %v1308_v3, %v1307_v2 }
 0x2fc   : > { %v1109_v7 = vpop.f32.mrf.mxu0  ;;  %v1126_v8 = vpop.f32.mrf.mxu1 }
 0x2fd   : > { %v1133_v9 = vpack.c.bf16 %v1126_v8, %v1126_v8  ;;  %v1305_v7 = vld [vmem:[%s2575_s14 + $0x20] sm:$0xff]  ;;  %v1306_v8 = vld [vmem:[%s2575_s14 + $0x28] sm:$0xff]  ;;  %1333 = vmatpush.bf16.msrb.mxu3 %v1320_v6 }
 0x2ff   : > { %1630 = vmatmul.msk.bf16.vlgmr.msrb.gmra.mxu1 %vm823_vm1, %v1133_v9 }
 0x300   : > { %v1090_v10 = vpop.f32.mrf.mxu3 }
 0x304   : > { %v1128_v11 = vpop.f32.mrf.mxu1 }
 0x305   : > { %v1319_v11 = vpack.c.bf16 %v1306_v8, %v1305_v7 }
 0x307   : > { %1334 = vmatpush.bf16.msrb.mxu3 %v1319_v11 }
 0x370   : > { %v1157_v12 = vpop.f32.mrf.mxu2 }
 0x371   : > { %v1219_v18 = vsel %vm1218_vm2, %v1157_v12, 0.0 }
 0x374   : > { %v1195_v13 = vpop.f32.mrf.mxu0 }
 0x375   : > { %v1222_v21 = vsel %vm1218_vm2, %v1195_v13, 0.0  ;;  %v1756_v13 = vld [vmem:[%s2571_s10] ss:$0 sm:$0xff] }
 0x378   : > { %v1159_v14 = vpop.f32.mrf.mxu2 }
 0x37c   : > { %v1197_v15 = vpop.f32.mrf.mxu0  ;;  %v1214_v16 = vpop.f32.mrf.mxu1 }
 0x37d   : > { %v1224_v24 = vsel %vm1218_vm2, %v1214_v16, 0.0  ;;  %v1757_v15 = vld [vmem:[%s2629_s23] ss:$0 sm:$0xff]  ;;  %s2634_s23 = smov %s2633_s29 }
 0x37e   : > { %v1176_v17 = vpop.f32.mrf.mxu3  ;;  %s2014_s12 = scalar_lea.hbm %s2634_s23, 16  ;;  %p2015_p8 = scmp.lt.s32.totalorder %s2009_s21, %s2634_s23 }
 0x37f   : > { %v1220_v19 = vsel %vm1218_vm2, %v1176_v17, 0.0  ;;  %p2016_p10 = scmp.lt.s32.totalorder %s2014_s12, %s2010_s11 }
 0x380   : > { %v1221_v20 = vadd.f32 %v1220_v19, %v1219_v18 }
 0x381   : > { %p2017_p11 = por %p2016_p10, %p2015_p8 }
 0x382   : > { %v1223_v22 = vadd.f32 %v1222_v21, %v1221_v20  ;;  %v1303_v20 = vld [vmem:[%s2575_s14 + $0x10] sm:$0xff]  ;;  %v1304_v21 = vld [vmem:[%s2575_s14 + $0x18] sm:$0xff] }
 0x383   : > { %p2018_p12 = pnand %p2017_p11, %p2013_p6 }
 0x384   : > { %v1225_v25 = vadd.f32 %v1224_v24, %v1223_v22  ;;  %v1216_v26 = vpop.f32.mrf.mxu1  ;;  %v1318_v22 = vpack.c.bf16 %v1304_v21, %v1303_v20  ;;  %v1302_v24 = vld [vmem:[%s2575_s14 + $0x8] sm:$0xff] }
 0x385   : > { %v1758_v26 = vld [vmem:[%s2630_s5] ss:$0 sm:$0xff] }
 0x386   : > { %v1178_v28 = vpop.f32.mrf.mxu3  ;;  %v1230_v29 = vadd.f32 %v1755_v23, %v1225_v25  ;;  %1335 = vmatpush.bf16.msrb.mxu3 %v1318_v22  ;;  %v1301_v23 = vld [vmem:[%s2575_s14] sm:$0xff] }
 0x387   : > { %v1317_v25 = vpack.c.bf16 %v1302_v24, %v1301_v23 }
 0x388   : > { %v1232_v30 = vadd.f32 %v1231_v27, %v1230_v29 }
 0x38a   : > { %v1235_v31 = vsel %vm1218_vm2, %v1232_v30, 0.0  ;;  %1336 = vmatpush.bf16.msrb.mxu3 %v1317_v25 }
 0x38b   : > { %1236 = vadd.xlane.f32.xlu2 %v1235_v31 }
 0x3fe   : > { %v1237_v39 = vpop.xlane.xlu2 %1236 }
 0x3ff   : > { %v1245_v40 = vmul.f32 %v2445_v38, %v1237_v39 }
 0x401   : > { %v1246_v41 = vsub.f32 %v1232_v30, %v1245_v40 }
 0x403   : > { %v1247_v42 = vmul.f32 %v1246_v41, %v1246_v41 }
 0x405   : > { %v1248_v43 = vsel %vm1218_vm2, %v1247_v42, 0.0 }
 0x406   : > { %1249 = vadd.xlane.f32.xlu0 %v1248_v43 }
 0x479   : > { %v1250_v53 = vpop.xlane.xlu0 %1249 }
 0x47a   : > { %v1251_v56 = vmul.f32 %v1250_v53, %v2445_v38  ;;  %v1760_v53 = vld [vmem:[%s2632_s2] ss:$0 sm:$0xff] }
 0x47c   : > { %v1252_v58 = vadd.f32 1e-05, %v1251_v56 }
 0x47e   : > { %1780 = vrsqrt.f32 %v1252_v58  ;;  %vm1259_vm5 = vweird.f32 %v1252_v58 }
 0x484   : > { %v1781_v1 = vpop.eup %1780 }
 0x485   : > { %v1254_v4 = vmul.f32 %v1781_v1, %v1252_v58  ;;  %vm1260_vm4 = vweird.f32 %v1781_v1 }
 0x486   : > { %vm1261_vm6 = vmor %vm1259_vm5, %vm1260_vm4 }
 0x487   : > { %v1255_v5 = vmul.f32 %v1781_v1, %v1254_v4 }
 0x489   : > { %v1256_v9 = vmul.f32 0.5, %v1255_v5 }
 0x48b   : > { %v1257_v10 = vsub.f32 1.5, %v1256_v9 }
 0x48d   : > { %v1258_v12 = vmul.f32 %v1781_v1, %v1257_v10 }
 0x48f   : > { %v1262_v14 = vsel %vm1261_vm6, %v1781_v1, %v1258_v12 }
 0x490   : > { %v1263_v16 = vmul.f32 %v1262_v14, %v1246_v41 }
 0x492   : > { %v1267_v17 = vmul.f32 %v1756_v13, %v1263_v16 }
 0x494   : > { %v1271_v18 = vadd.f32 %v1757_v15, %v1267_v17 }
 0x496   : > { %v1272_v19 = vpack.c.bf16 %v1271_v18, %v1271_v18 }
 0x498   : > { %1631 = vmatmul.msk.bf16.vlgmr.msrb.gmra.mxu2 %vm1218_vm2, %v1272_v19 }
 0x51b   : > { %v1295_v27 = vpop.f32.mrf.mxu2 }
 0x51c   : > { %v1296_v28 = vadd.f32 %v1758_v26, %v1295_v27 }
 0x51e   : > { %v1299_v29 = vmax.f32 %v1296_v28, 0.0 }
 0x520   : > { %v1300_v30 = vpack.c.bf16 %v1299_v29, %v1299_v29 }
 0x522   : > { %1337 = vmatmul.bf16.vlgmr.msrb.gmra.mxu3 %v1300_v30 }
 0x523   : > { %v1297_v31 = vpop.f32.mrf.mxu2 }
 0x5a5   : > { %v1338_v33 = vpop.f32.mrf.mxu3 }
 0x5a6   : > { %v1339_v34 = vadd.f32 %v1759_v32, %v1338_v33 }
 0x5a8   : > { %v1342_v35 = vadd.f32 %v1339_v34, %v1271_v18 }
 0x5aa   : > { %v1345_v36 = vsel %vm1218_vm2, %v1342_v35, 0.0 }
 0x5ab   : > { %1346 = vadd.xlane.f32.xlu1 %v1345_v36 }
 0x5ad   : > { %v1340_v37 = vpop.f32.mrf.mxu3 }
 0x61e   : > { %v1347_v39 = vpop.xlane.xlu1 %1346 }
 0x61f   : > { %v1348_v40 = vmul.f32 %v1347_v39, %v2445_v38 }
 0x621   : > { %v1349_v41 = vsub.f32 %v1342_v35, %v1348_v40 }
 0x623   : > { %v1350_v42 = vmul.f32 %v1349_v41, %v1349_v41 }
 0x625   : > { %v1351_v43 = vsel %vm1218_vm2, %v1350_v42, 0.0 }
 0x626   : > { %1352 = vadd.xlane.f32.xlu2 %v1351_v43 }
 0x699   : > { %v1353_v44 = vpop.xlane.xlu2 %1352 }
 0x69a   : > { %v1354_v45 = vmul.f32 %v1353_v44, %v2445_v38 }
 0x69c   : > { %v1355_v46 = vadd.f32 1e-05, %v1354_v45 }
 0x69e   : > { %1782 = vrsqrt.f32 %v1355_v46  ;;  %vm1362_vm8 = vweird.f32 %v1355_v46 }
 0x6a4   : > { %v1783_v47 = vpop.eup %1782 }
 0x6a5   : > { %v1357_v48 = vmul.f32 %v1783_v47, %v1355_v46  ;;  %vm1363_vm7 = vweird.f32 %v1783_v47 }
 0x6a6   : > { %vm1364_vm9 = vmor %vm1362_vm8, %vm1363_vm7 }
 0x6a7   : > { %v1358_v49 = vmul.f32 %v1783_v47, %v1357_v48 }
 0x6a9   : > { %v1359_v50 = vmul.f32 0.5, %v1358_v49 }
 0x6ab   : > { %v1360_v51 = vsub.f32 1.5, %v1359_v50 }
 0x6ad   : > { %v1361_v52 = vmul.f32 %v1783_v47, %v1360_v51 }
 0x6af   : > { %v1365_v38 = vsel %vm1364_vm9, %v1783_v47, %v1361_v52 }
 0x6b0   : > { %v1366_v54 = vmul.f32 %v1365_v38, %v1349_v41 }
 0x6b2   : > { %v1370_v56 = vmul.f32 %v1760_v53, %v1366_v54 }
 0x6b4   : > { %v1374_v57 = vadd.f32 %v1761_v55, %v1370_v56 }
 0x6b6   : > { %1375 = vst.msk [vmem:[%s788_s30] sm:$0xff] %vm1218_vm2, %v1374_v57 }
 0x6b7   : > { %2021 = shalt.err (!%p2018_p12)
}
 0x6b8   : > { %1661 = dma.vmem_to_hbm [thread:$0]  (%p2274_p2), %s1391_s1, 128, %s1393_s7, %s1377_s15  }
 0x6b9 PF: > { %s2637_s16 = sld [smem:[#allocation20_spill]] }
 0x6ba   : > { %s2639_s27 = sld [smem:[#allocation22_spill]] }
 0x6bf   : > { %s1404_s19 = sand.u32 1, %s2637_s16  }
 0x6c0   : > { %p2640_p13 = scmp.ge.s32.totalorder %s2639_s27, 2  ;;  %s1405_s2 = scalar_lea.sflag [#allocation4], %s1404_s19 }
 0x6c2   : > { %p1687_p0 = pnand %p2640_p13, %p2281_p7 }
 0x6c4   : > { %p1688_p5 = pneg %p1687_p0 }
 0x6c6   : > { %2063 = dma.done.wait (%p1688_p5), %s1405_s2, 128  }
 0x6c7   : > { %2065 = vsyncadd (%p1688_p5), %s1405_s2, 4294967168  ;;  %s39_s19 = sadd.s32 1, %s2639_s27   ;;  %s2641_s25 = sld [smem:[#allocation21_spill]] }
 0x6c8   : > { %p36_p9 = scmp.ge.s32.totalorder %s39_s19, 4   ;;  %s2642_s29 = sld [smem:[#allocation25_spill]] }
 0x6c9   : > { %s2643_s22 = sld [smem:[#allocation23_spill]]  ;;  %s2644_s27 = smov %s2072_s28 }
 0x6ca   : > { %s2646_s30 = smov %s2084_s0 }
 0x6cb   :  { %38 = sbr.rel (!%p36_p9) target bundleno = 26 (0x1a), region = 183 }
 0x6cd   : > { %s2645_s28 = smov %s2641_s25 }
 0x6cf   : > { %s2647_s0 = smov %s2643_s22 }
 0x6d0   :  { %1411 = vsyncpa [#allocation3], 1 }
 0x6d1   :  { %1413 = vsyncpa [#allocation3 + $0x1], 1 }
 0x6d2   :  { %1414 = vsyncpa [#allocation6], 1 }
 0x6d3   :  { %1416 = vsyncpa [#allocation6 + $0x1], 1 }
 0x6d4   :  { %1417 = vsyncpa [#allocation9], 1 }
 0x6d5   :  { %1418 = vsyncpa [#allocation12], 1 }
 0x6d6   :  { %1419 = vsyncpa [#allocation4], 1 }
 0x6d7   :  { %1421 = vsyncpa [#allocation4 + $0x1], 1 }

// kernel: tpu_custom_call.1
= control target key start
LH: loop header
LB: loop body
LE: loop exit
PB: predicated region body
PF: predicated region fallthrough
CT: control target
= control target key end

     0   :  { %s2561_s0 = inlined_call_operand.vmem [shape: f32[2,4,8,8], index: 0, kind: input, shape index: {}]   ;;  %s2562_s1 = inlined_call_operand.vmem [shape: f32[2,4,8,8], index: 1, kind: input, shape index: {}]   ;;  %s2563_s2 = inlined_call_operand.hbm [shape: f32[2,4,8,8], index: 2, kind: input, shape index: {}]   ;;  %s2564_s3 = inlined_call_operand.hbm [shape: f32[2,8,32], index: 3, kind: input, shape index: {}]   ;;  %s2565_s4 = inlined_call_operand.hbm [shape: f32[2,8,8], index: 4, kind: input, shape index: {}]   ;;  %s2566_s5 = inlined_call_operand.hbm [shape: f32[8,8], index: 5, kind: input, shape index: {}]   ;;  %s2567_s6 = inlined_call_operand.hbm [shape: f32[8,8], index: 6, kind: input, shape index: {}]   ;;  %s2568_s7 = inlined_call_operand.hbm [shape: f32[8,8], index: 7, kind: input, shape index: {}]   ;;  %s2569_s8 = inlined_call_operand.vmem [shape: f32[4,8,32], index: 8, kind: input, shape index: {}]   ;;  %s2570_s9 = inlined_call_operand.vmem [shape: f32[1,32], index: 9, kind: input, shape index: {}]   ;;  %s2571_s10 = inlined_call_operand.vmem [shape: f32[1,32], index: 10, kind: input, shape index: {}]   ;;  %s2572_s11 = inlined_call_operand.vmem [shape: f32[1,32], index: 11, kind: input, shape index: {}]   ;;  %s2573_s12 = inlined_call_operand.hbm [shape: f32[32,128], index: 12, kind: input, shape index: {}]   ;;  %s2574_s13 = inlined_call_operand.vmem [shape: f32[1,128], index: 13, kind: input, shape index: {}]   ;;  %s2575_s14 = inlined_call_operand.vmem [shape: f32[128,32], index: 14, kind: input, shape index: {}]   ;;  %s2576_s15 = inlined_call_operand.vmem [shape: f32[1,32], index: 15, kind: input, shape index: {}]   ;;  %s2577_s16 = inlined_call_operand.vmem [shape: f32[1,32], index: 16, kind: input, shape index: {}]   ;;  %s2578_s17 = inlined_call_operand.vmem [shape: f32[1,32], index: 17, kind: input, shape index: {}]   ;;  %s2579_s18 = inlined_call_operand.hbm [shape: f32[2,8,32], index: 18, kind: output, shape index: {}]  }
   0x1   :  { %2590 = sst [smem:[#allocation27_spill]] %s2561_s0 }
   0x2   :  { %2591 = sst [smem:[#allocation28_spill]] %s2562_s1 }
   0x3   :  { %2592 = sst [smem:[#allocation29_spill]] %s2563_s2 }
   0x4   :  { %2593 = sst [smem:[#allocation30_spill]] %s2564_s3 }
   0x5   :  { %2594 = sst [smem:[#allocation31_spill]] %s2565_s4 }
   0x6   :  { %2595 = sst [smem:[#allocation32_spill]] %s2566_s5 }
   0x7   :  { %2596 = sst [smem:[#allocation33_spill]] %s2567_s6 }
   0x8   :  { %2597 = sst [smem:[#allocation34_spill]] %s2568_s7 }
   0x9   :  { %2598 = sst [smem:[#allocation35_spill]] %s2572_s11 }
   0xa   :  { %2599 = sst [smem:[#allocation36_spill]] %s2573_s12 }
   0xb   :  { %2600 = sst [smem:[#allocation37_spill]] %s2574_s13 }
   0xc   :  { %2601 = sst [smem:[#allocation38_spill]] %s2576_s15 }
   0xd   :  { %2602 = sst [smem:[#allocation39_spill]] %s2577_s16 }
   0xe   :  { %2603 = sst [smem:[#allocation40_spill]] %s2578_s17 }
   0xf   :  { %2604 = sst [smem:[#allocation41_spill]] %s2579_s18 }
  0x10   :  { %23 = vsyncpa [#allocation3], 0 }
  0x11   :  { %25 = vsyncpa [#allocation3 + $0x1], 0 }
  0x12   :  { %26 = vsyncpa [#allocation6], 0 }
  0x13   :  { %28 = vsyncpa [#allocation6 + $0x1], 0 }
  0x14   :  { %29 = vsyncpa [#allocation9], 0 }
  0x15   :  { %30 = vsyncpa [#allocation12], 0 }
  0x16   :  { %31 = vsyncpa [#allocation4], 0 }
  0x17   :  { %33 = vsyncpa [#allocation4 + $0x1], 0  ;;  %s2192_s27 = smov 0   ;;  %s2194_s28 = smov 0  }
  0x18   :  { %s2196_s29 = smov 0   ;;  %s2198_s30 = smov 0  }
  0x19   :  { %s2200_s0 = smov 0   ;;  %s2202_s19 = smov 0  }
  0x1a LB: > { %2605 = sst [smem:[#allocation20_spill]] %s2068_s27  ;;  %s2223_s1 = sadd.s32 4294967295, %s2088_s19   ;;  %s2088_s19 = sphi %s2202_s19, %s39_s19   ;;  %s2084_s0 = sphi %s2200_s0, %s2647_s0   ;;  %s2080_s30 = sphi %s2198_s30, %s2646_s30   ;;  %s2076_s29 = sphi %s2196_s29, %s2642_s29   ;;  %s2072_s28 = sphi %s2194_s28, %s2645_s28   ;;  %s2068_s27 = sphi %s2192_s27, %s2644_s27  }
  0x1b   : > { %2606 = sst [smem:[#allocation21_spill]] %s2076_s29  ;;  %p1587_p0 = scmp.ge.s32.totalorder %s2088_s19, 1 }
  0x1c   : > { %2607 = sst [smem:[#allocation22_spill]] %s2088_s19  ;;  %p126_p1 = scmp.eq.s32.totalorder %s2223_s1, 0 }
  0x1d   : > { %p493_p2 = scmp.lt.s32.totalorder %s2088_s19, 3  ;;  %s2608_s5 = sld [smem:[#allocation32_spill]] }
  0x1e   : > { %s2090_s23 = smov [#allocation8]   ;;  %s2610_s7 = sld [smem:[#allocation34_spill]] }
  0x1f   : > { %p2231_p3 = pnand %p1587_p0, %p493_p2  ;;  %s507_s24 = sshll.u32 %s2090_s23, 4  ;;  %s508_s24 = int_to_ptr.vmem [resolvable:$true] %s507_s24 }
  0x20   : > { %s1586_s23 = sadd.s32 4294967294, %s2088_s19   ;;  %s51_s25 = sadd.s32 1, %s2084_s0 }
  0x21   : > { %p1663_p5 = pneg %p2231_p3  ;;  %p53_p7 = scmp.ge.s32.totalorder %s51_s25, 2 }
  0x22   : > { %s112_s26 = sadd.s32 1, %s2076_s29  ;;  %p119_p8 = scmp.ne.s32.totalorder %s2076_s29, %s2072_s28 }
  0x23   : > { %s505_s22 = sshll.u32 %s2608_s5, 4  ;;  %p2243_p6 = pnand %p1663_p5, %p126_p1  ;;  %s506_s22 = int_to_ptr.hbm [resolvable:$true] %s505_s22 }
  0x24   : > { %s529_s20 = sshll.u32 %s2610_s7, 4  ;;  %s2091_s5 = smov [#allocation11]   ;;  %s530_s20 = int_to_ptr.hbm [resolvable:$true] %s529_s20 }
  0x25   : > { %s531_s17 = sshll.u32 %s2091_s5, 4  ;;  %p120_p9 = scmp.eq.s32.totalorder %s2088_s19, 0  ;;  %s532_s17 = int_to_ptr.vmem [resolvable:$true] %s531_s17 }
  0x26   : > { %1666 = dma.hbm_to_vmem [thread:$0]  (!%p2243_p6), %s506_s22, 128, %s508_s24, [#allocation9]  }
  0x27   : > { %1672 = dma.hbm_to_vmem [thread:$0]  (!%p2243_p6), %s530_s20, 128, %s532_s17, [#allocation12]  }
  0x28   : > { %s2649_s25 = smov (%p53_p7, %s51_s25), 0  ;;  %p2259_p10 = por %p120_p9, %p119_p8 }
  0x29   : > { %2612 = sst [smem:[#allocation23_spill]] %s2649_s25  ;;  %p125_p11 = scmp.ne.s32.totalorder %s2072_s28, %s2068_s27 }
  0x2a   : > { %s109_s17 = ssub.s32 %s2084_s0, %s2649_s25  ;;  %p480_p12 = scmp.eq.s32.totalorder %s2223_s1, 1 }
  0x2b   : > { %p110_p13 = scmp.eq.s32.totalorder %s109_s17, 0  ;;  %p2270_p0 = por %p126_p1, %p125_p11 }
  0x2c   : > { %p2274_p2 = por %p480_p12, %p119_p8  ;;  %p486_p5 = scmp.eq.s32.totalorder %s1586_s23, 1 }
  0x2d   : > { %s2279_s20 = scalar_select %p110_p13, %s2076_s29, %s112_s26  }
  0x2e   : > { %s2615_s24 = scalar_select %p2274_p2, 1, 0 }
  0x2f   : > { %2617 = sst [smem:[#allocation25_spill]] %s2279_s20  ;;  %p2281_p7 = por %p486_p5, %p125_p11 }
  0x30   : > { %2616 = sst [smem:[#allocation24_spill]] %s2615_s24  ;;  %p1694_p9 = scmp.lt.s32.totalorder %s2088_s19, 2 }
  0x31   : > { %s2618_s7 = scalar_select %p2281_p7, 1, 0 }
  0x32   : > { %s2287_s25 = sand.u32 1, %s2076_s29   ;;  %s624_s17 = sand.u32 1, %s2088_s19  }
  0x33   : > { %2619 = sst [smem:[#allocation26_spill]] %s2618_s7  ;;  %p2292_p4 = pnand %p1694_p9, %p2259_p10 }
  0x34   : > { %s2589_s24 = sshll.u32 %s2287_s25, 3  ;;  %s1597_s23 = sshll.u32 %s2084_s0, 3 }
  0x35   : > { %s2621_s3 = sld [smem:[#allocation30_spill]]  ;;  %s628_s7 = scalar_lea.vmem [#allocation5], %s2589_s24 }
  0x36   : > { %s637_s29 = sshll.u32 %s628_s7, 4  ;;  %s2303_s19 = scalar_lea.sflag [#allocation6], %s624_s17  ;;  %s638_s29 = int_to_ptr.vmem [resolvable:$true] %s637_s29 }
  0x37   : > { %s2622_s4 = sld [smem:[#allocation31_spill]]  ;;  %s2093_s15 = smov [#allocation13]  }
  0x38   : > { %s2623_s6 = sld [smem:[#allocation33_spill]]  ;;  %s1593_s5 = sshll.u32 %s2287_s25, 5 }
  0x39   : > { %s2624_s12 = sld [smem:[#allocation36_spill]] }
  0x3b   : > { %s633_s18 = scalar_lea.hbm %s2621_s3, %s1597_s23  ;;  %s1636_s3 = sshll.u32 %s2084_s0, 5 }
  0x3c   : > { %s635_s16 = sshll.u32 %s633_s18, 4  ;;  %s2092_s18 = smov [#allocation10]   ;;  %s636_s16 = int_to_ptr.hbm [resolvable:$true] %s635_s16 }
  0x3d   : > { %1682 = dma.hbm_to_vmem [thread:$0]  (!%p2292_p4), %s636_s16, 128, %s638_s29, %s2303_s19  }
  0x3e   : > { %s2311_s13 = scalar_lea.hbm %s2622_s4, %s1597_s23  ;;  %s517_s7 = sshll.u32 %s2623_s6, 4  ;;  %s518_s7 = int_to_ptr.hbm [resolvable:$true] %s517_s7 }
  0x3f   : > { %s519_s24 = sshll.u32 %s2092_s18, 4  ;;  %s552_s11 = sshll.u32 %s2624_s12, 4  ;;  %s520_s24 = int_to_ptr.vmem [resolvable:$true] %s519_s24  ;;  %s553_s11 = int_to_ptr.hbm [resolvable:$true] %s552_s11 }
  0x40   : > { %1669 = dma.hbm_to_vmem [thread:$0]  (!%p2243_p6), %s518_s7, 128, %s520_s24, [#allocation9]  }
  0x41   : > { %s554_s16 = sshll.u32 %s2093_s15, 4  ;;  %s2094_s29 = smov 128   ;;  %s555_s16 = int_to_ptr.vmem [resolvable:$true] %s554_s16 }
  0x42   : > { %s2095_s23 = smov 8   ;;  %s2625_s18 = sld [smem:[#allocation29_spill]] }
  0x43   : > { %1675 = dma.hbm_to_vmem [thread:$0]  (!%p2243_p6), %s553_s11, 512, %s555_s16, [#allocation12], %s2094_s29, %s2094_s29, %s2095_s23  }
  0x44   : > { %s606_s24 = scalar_lea.vmem [#allocation2], %s1593_s5  ;;  %s603_s15 = scalar_lea.sflag [#allocation3], %s2287_s25 }
  0x45   : > { %s614_s7 = sshll.u32 %s606_s24, 4  ;;  %s655_s6 = sshll.u32 %s2311_s13, 4  ;;  %s615_s7 = int_to_ptr.vmem [resolvable:$true] %s614_s7  ;;  %s656_s6 = int_to_ptr.hbm [resolvable:$true] %s655_s6 }
  0x46   : > { %s2626_s12 = sshll.u32 %s2287_s25, 3  ;;  %s2340_s16 = sand.u32 (!%p2231_p3), 1, %s2072_s28  }
  0x47   : > { %s648_s21 = scalar_lea.vmem [#allocation7], %s2626_s12  ;;  %666 = sbr.rel (%p2231_p3) target bundleno = 1721 (0x6b9), region = 92 }
  0x48   : > { %s611_s17 = scalar_lea.hbm %s2625_s18, %s1636_s3  ;;  %s657_s11 = sshll.u32 %s648_s21, 4  ;;  %s658_s11 = int_to_ptr.vmem [resolvable:$true] %s657_s11 }
  0x49   : > { %s612_s4 = sshll.u32 %s611_s17, 4  ;;  %s1601_s5 = sshll.u32 (!%p2231_p3), %s2340_s16, 5  ;;  %s613_s4 = int_to_ptr.hbm [resolvable:$true] %s612_s4 }
  0x4a   : > { %1679 = dma.hbm_to_vmem [thread:$0]  (!%p2292_p4), %s613_s4, 512, %s615_s7, %s603_s15, %s2094_s29, %s2094_s29, %s2095_s23  }
  0x4b   : > { %1685 = dma.hbm_to_vmem [thread:$0]  (!%p2292_p4), %s656_s6, 128, %s658_s11, %s2303_s19  }
  0x4c   : > { %s669_s3 = scalar_lea.sflag [#allocation3], %s2340_s16  ;;  %s2344_s4 = scalar_lea.vmem [#allocation2], %s1601_s5 }
  0x4d   : > { %2047 = dma.done.wait (%p2270_p0), %s669_s3, 512  }
  0x4e   : > { %2049 = vsyncadd (%p2270_p0), %s669_s3, 4294966784  ;;  %s678_s6 = sand.u32 1, %s2223_s1   ;;  %s2352_s12 = sshll.u32 %s2340_s16, 3 }
  0x4f   : > { %s679_s13 = scalar_lea.sflag [#allocation6], %s678_s6  ;;  %s682_s27 = scalar_lea.vmem [#allocation5], %s2352_s12 }
  0x50   : > { %2051 = dma.done.wait (%p2270_p0), %s679_s13, 256  }
  0x51   : > { %2053 = vsyncadd (%p2270_p0), %s679_s13, 4294967040  ;;  %s692_s19 = scalar_lea.vmem [#allocation7], %s2352_s12 }
  0x52   : > { %2055 = dma.done.wait (%p126_p1), [#allocation9], 256  }
  0x53   : > { %2057 = vsyncadd (%p126_p1), [#allocation9], 4294967040 }
  0x54   : > { %2059 = dma.done.wait (%p126_p1), [#allocation12], 640  }
  0x55   : > { %2061 = vsyncadd (%p126_p1), [#allocation12], 4294966656  ;;  %p789_p3 = scmp.lt.s32.totalorder %s2080_s30, 1  ;;  %s2627_s23 = sld [smem:[#allocation28_spill]]  ;;  %v817_v0 = vld [vmem:[#allocation10] sm:$0xff]  ;;  %vm830_vm0 = vcmask 1043456  }
  0x56   : > { %s2628_s17 = sld [smem:[#allocation27_spill]]  ;;  %v818_v3 = vpack.c.bf16 %v817_v0, %v817_v0  ;;  %v815_v4 = vld [vmem:[#allocation8] sm:$0xff]  ;;  %vm823_vm1 = vcmask 64512   ;;  %v925_v42 = vld [vmem:[%s692_s19] sm:$0xff]  ;;  %v812_v46 = vld [vmem:[%s2344_s4 + $0x8] sm:$0xff]  ;;  %vm1218_vm2 = vcmask 261120  }
  0x57   : > { %s790_s2 = scalar_select %p789_p3, %s2080_s30, 1  ;;  %v816_v7 = vpack.c.bf16 %v815_v4, %v815_v4  ;;  %v819_v44 = vld [vmem:[#allocation11] sm:$0xff]  ;;  %v811_v45 = vld [vmem:[%s2344_s4] sm:$0xff] }
  0x58   : > { %v862_v8 = vsel %vm830_vm0, %v818_v3, 0  ;;  %v820_v48 = vpack.c.bf16 %v819_v44, %v819_v44  ;;  %v883_v51 = vpack.c.bf16 %v812_v46, %v811_v45  ;;  %s2630_s5 = sld [smem:[#allocation37_spill]]  ;;  %s1633_s13 = sshll.u32 %s2080_s30, 3 }
  0x59   : > { %s1637_s25 = sshll.u32 %s790_s2, 5  ;;  %871 = vmatpush.bf16.msra.mxu1 %v862_v8  ;;  %v832_v10 = vsel %vm830_vm0, %v816_v7, 0  ;;  %s2631_s6 = sld [smem:[#allocation38_spill]] }
  0x5a   : > { %841 = vmatpush.bf16.msra.mxu0 %v832_v10  ;;  %v892_v50 = vsel %vm830_vm0, %v820_v48, 0  ;;  %s2632_s2 = sld [smem:[#allocation39_spill]]  ;;  %s788_s30 = scalar_lea.vmem [#allocation14], %s2352_s12 }
  0x5b   : > { %s801_s20 = scalar_lea.vmem %s2627_s23, %s1637_s25  ;;  %901 = vmatpush.bf16.msra.mxu2 %v892_v50  ;;  %s2629_s23 = sld [smem:[#allocation35_spill]] }
  0x5c   : > { %s796_s24 = scalar_lea.vmem %s2628_s17, %s1637_s25  ;;  %v807_v1 = vld [vmem:[%s801_s20] sm:$0xff]  ;;  %v808_v2 = vld [vmem:[%s801_s20 + $0x8] sm:$0xff]  ;;  %v809_v12 = vld [vmem:[%s801_s20 + $0x10] sm:$0xff]  ;;  %s2633_s29 = sld [smem:[#allocation41_spill]] }
  0x5d   : > { %v803_v5 = vld [vmem:[%s796_s24] sm:$0xff]  ;;  %v804_v6 = vld [vmem:[%s796_s24 + $0x8] sm:$0xff]  ;;  %v853_v9 = vpack.c.bf16 %v808_v2, %v807_v1  ;;  %v810_v13 = vld [vmem:[%s801_s20 + $0x18] sm:$0xff]  ;;  %s1390_s1 = sshll.u32 %s788_s30, 4  ;;  %s1377_s15 = scalar_lea.sflag [#allocation4], %s2340_s16  ;;  %s1391_s1 = int_to_ptr.vmem [resolvable:$true] %s1390_s1 }
  0x5e   : > { %v821_v11 = vpack.c.bf16 %v804_v6, %v803_v5  ;;  %v805_v14 = vld [vmem:[%s796_s24 + $0x10] sm:$0xff]  ;;  %v806_v15 = vld [vmem:[%s796_s24 + $0x18] sm:$0xff]  ;;  %v854_v16 = vpack.c.bf16 %v810_v13, %v809_v12  ;;  %1617 = vmatmul.msk.bf16.vlgmr.msra.gmra.mxu2 %vm823_vm1, %v883_v51  ;;  %s2636_s24 = sld [smem:[#allocation40_spill]] }
  0x5f   : > { %1615 = vmatmul.msk.bf16.vlgmr.msra.gmra.mxu1 %vm823_vm1, %v853_v9  ;;  %v822_v17 = vpack.c.bf16 %v806_v15, %v805_v14  ;;  %v813_v1 = vld [vmem:[%s2344_s4 + $0x10] sm:$0xff]  ;;  %v814_v2 = vld [vmem:[%s2344_s4 + $0x18] sm:$0xff] }
  0x60   : > { %1613 = vmatmul.msk.bf16.vlgmr.msra.gmra.mxu0 %vm823_vm1, %v821_v11  ;;  %v884_v3 = vpack.c.bf16 %v814_v2, %v813_v1 }
  0x62   : > { %s1388_s20 = scalar_lea.hbm %s2633_s29, %s1633_s13 }
  0x63   : > { %s1392_s7 = sshll.u32 %s1388_s20, 4  ;;  %s1393_s7 = int_to_ptr.hbm [resolvable:$true] %s1392_s7 }
  0x64   : > { %s2008_s21 = sshra.s32 %s1393_s7, 4  ;;  %s2009_s21 = int_to_ptr.hbm [resolvable:$true] %s2008_s21 }
  0x65   : > { %s2010_s11 = scalar_lea.hbm %s2009_s21, 8 }
  0x66   : > { %p2011_p1 = scmp.ne.s32.totalorder %s2009_s21, %s2010_s11 }
  0x68   : > { %p2012_p4 = pnand %p2011_p1, %p2274_p2 }
  0x6a   : > { %p2013_p6 = pneg %p2012_p4 }
  0x6e   : > { %1618 = vmatmul.msk.bf16.gmra.mxu2 %vm823_vm1, %v884_v3 }
  0x6f   : > { %1616 = vmatmul.msk.bf16.gmra.mxu1 %vm823_vm1, %v854_v16 }
  0x70   : > { %1614 = vmatmul.msk.bf16.gmra.mxu0 %vm823_vm1, %v822_v17 }
  0xdc   : > { %v873_v18 = vpop.f32.mrf.mxu1 }
  0xdd   : > { %v921_v19 = vpack.c.bf16 %v873_v18, %v873_v18  ;;  %v843_v20 = vpop.f32.mrf.mxu0 }
  0xde   : > { %v913_v22 = vmul.f32 0.17677669, %v843_v20 }
  0xdf   : > { %v930_v21 = vsel %vm823_vm1, %v921_v19, 0 }
  0xe0   : > { %939 = vmatpush.bf16.xpose.msrb.mxu0 %v930_v21  ;;  %v917_v23 = vpack.c.bf16 %v913_v22, %v913_v22 }
  0xe4   : > { %v875_v24 = vpop.f32.mrf.mxu1 }
  0xe5   : > { %v922_v25 = vpack.c.bf16 %v875_v24, %v875_v24  ;;  %v845_v26 = vpop.f32.mrf.mxu0  ;;  %v903_v24 = vpop.f32.mrf.mxu2 }
  0xe6   : > { %v914_v28 = vmul.f32 0.17677669, %v845_v26 }
  0xe7   : > { %1619 = vmatmul.msk.bf16.vlgmr.msrb.gmra.mxu0 %vm823_vm1, %v917_v23  ;;  %v949_v27 = vsel %vm823_vm1, %v922_v25, 0  ;;  %v1050_v25 = vpack.c.bf16 %v903_v24, %v903_v24 }
  0xe8   : > { %958 = vmatpush.bf16.xpose.msra.mxu3 %v949_v27  ;;  %v918_v30 = vpack.c.bf16 %v914_v28, %v914_v28 }
  0xe9   : > { %v1058_v26 = vsel %vm830_vm0, %v1050_v25, 0 }
  0xea   : > { %1067 = vmatpush.bf16.msrb.mxu2 %v1058_v26 }
  0xec   : > { %v878_v29 = vpop.f32.mrf.mxu1 }
  0xed   : > { %v923_v31 = vpack.c.bf16 %v878_v29, %v878_v29  ;;  %v848_v32 = vpop.f32.mrf.mxu0  ;;  %v905_v27 = vpop.f32.mrf.mxu2 }
  0xee   : > { %v915_v34 = vmul.f32 0.17677669, %v848_v32  ;;  %v1051_v28 = vpack.c.bf16 %v905_v27, %v905_v27  ;;  %v1231_v27 = vld [vmem:[%s682_s27] sm:$0xff] }
  0xef   : > { %v968_v33 = vsel %vm823_vm1, %v923_v31, 0  ;;  %1620 = vmatmul.msk.bf16.vlgmr.msra.gmra.mxu3 %vm823_vm1, %v918_v30 }
  0xf0   : > { %977 = vmatpush.bf16.xpose.msra.mxu0 %v968_v33  ;;  %v919_v35 = vpack.c.bf16 %v915_v34, %v915_v34  ;;  %v1077_v29 = vsel %vm830_vm0, %v1051_v28, 0 }
  0xf1   : > { %1086 = vmatpush.bf16.msrb.mxu3 %v1077_v29 }
  0xf4   : > { %v880_v36 = vpop.f32.mrf.mxu1 }
  0xf5   : > { %v924_v37 = vpack.c.bf16 %v880_v36, %v880_v36  ;;  %v850_v38 = vpop.f32.mrf.mxu0  ;;  %v908_v30 = vpop.f32.mrf.mxu2 }
  0xf6   : > { %v916_v40 = vmul.f32 0.17677669, %v850_v38  ;;  %v1052_v31 = vpack.c.bf16 %v908_v30, %v908_v30 }
  0xf7   : > { %1621 = vmatmul.msk.bf16.vlgmr.msra.gmra.mxu0 %vm823_vm1, %v919_v35  ;;  %v987_v39 = vsel %vm823_vm1, %v924_v37, 0 }
  0xf8   : > { %996 = vmatpush.bf16.xpose.msrb.mxu1 %v987_v39  ;;  %v920_v41 = vpack.c.bf16 %v916_v40, %v916_v40  ;;  %v1096_v32 = vsel %vm830_vm0, %v1052_v31, 0 }
  0xf9   : > { %1105 = vmatpush.bf16.msrb.mxu0 %v1096_v32  ;;  %v2096_v32 = vmov 32.0  }
  0xfd   : > { %v910_v33 = vpop.f32.mrf.mxu2 }
  0xfe   : > { %v1053_v34 = vpack.c.bf16 %v910_v33, %v910_v33 }
  0xff   : > { %1622 = vmatmul.msk.bf16.vlgmr.msrb.gmra.mxu1 %vm823_vm1, %v920_v41 }
 0x100   : > { %v1115_v35 = vsel %vm830_vm0, %v1053_v34, 0 }
 0x101   : > { %1124 = vmatpush.bf16.msra.mxu1 %v1115_v35 }
 0x164   : > { %v941_v43 = vpop.f32.mrf.mxu0 }
 0x165   : > { %v942_v47 = vadd.f32 %v941_v43, %v925_v42 }
 0x167   : > { %v1002_v49 = vsel %vm823_vm1, %v942_v47, -inf }
 0x168   : > { %1003 = vmax.xlane.f32.xlu0 %v1002_v49 }
 0x16c   : > { %v943_v52 = vpop.f32.mrf.mxu0 }
 0x16d   : > { %v1134_v52 = vld [vmem:[%s2569_s8] sm:$0xff] }
 0x172   : > { %v960_v53 = vpop.f32.mrf.mxu3 }
 0x173   : > { %v961_v54 = vadd.f32 %v960_v53, %v925_v42  ;;  %v1138_v53 = vpack.c.bf16 %v1134_v52, %v1134_v52  ;;  %v1313_v52 = vld [vmem:[%s2575_s14 + $0x60] sm:$0xff] }
 0x174   : > { %v979_v55 = vpop.f32.mrf.mxu0 }
 0x175   : > { %v980_v56 = vadd.f32 %v979_v55, %v925_v42  ;;  %v1005_v57 = vsel %vm823_vm1, %v961_v54, -inf  ;;  %v1136_v55 = vld [vmem:[%s2569_s8 + $0x10] sm:$0xff] }
 0x176   : > { %1006 = vmax.xlane.f32.xlu0 %v1005_v57 }
 0x177   : > { %v1008_v58 = vsel %vm823_vm1, %v980_v56, -inf }
 0x178   : > { %1009 = vmax.xlane.f32.xlu1 %v1008_v58  ;;  %v1135_v58 = vld [vmem:[%s2569_s8 + $0x8] sm:$0xff] }
 0x17a   : > { %v962_v59 = vpop.f32.mrf.mxu3 }
 0x17b   : > { %v1139_v59 = vpack.c.bf16 %v1135_v58, %v1135_v58 }
 0x17c   : > { %v998_v60 = vpop.f32.mrf.mxu1  ;;  %v981_v61 = vpop.f32.mrf.mxu0 }
 0x17d   : > { %v999_v62 = vadd.f32 %v998_v60, %v925_v42  ;;  %v1165_v60 = vsel %vm830_vm0, %v1139_v59, 0  ;;  %v1137_v61 = vld [vmem:[%s2569_s8 + $0x18] sm:$0xff]  ;;  %v1311_v59 = vld [vmem:[%s2575_s14 + $0x50] sm:$0xff] }
 0x17e   : > { %1174 = vmatpush.bf16.msra.mxu3 %v1165_v60  ;;  %v1312_v60 = vld [vmem:[%s2575_s14 + $0x58] sm:$0xff] }
 0x17f   : > { %v1011_v63 = vsel %vm823_vm1, %v999_v62, -inf }
 0x180   : > { %1012 = vmax.xlane.f32.xlu1 %v1011_v63 }
 0x184   : > { %v1000_v0 = vpop.f32.mrf.mxu1 }
 0x1db   : > { %v1004_v4 = vpop.xlane.xlu0 %1003 }
 0x1dc   : > { %v1014_v5 = vsub.f32 %v942_v47, %v1004_v4 }
 0x1de   : > { %v1018_v6 = vmul.f32 1.442695, %v1014_v5 }
 0x1e0   : > { %1762 = vpow2.f32 %v1018_v6 }
 0x1e6   : > { %v1763_v7 = vpop.eup %1762 }
 0x1e7   : > { %v1026_v8 = vsel %vm823_vm1, %v1763_v7, 0.0 }
 0x1e8   : > { %1027 = vadd.xlane.f32.xlu2 %v1026_v8 }
 0x1e9   : > { %v1007_v9 = vpop.xlane.xlu0 %1006 }
 0x1ea   : > { %v1015_v10 = vsub.f32 %v961_v54, %v1007_v9  ;;  %v1146_v54 = vsel %vm830_vm0, %v1138_v53, 0 }
 0x1eb   : > { %v1010_v11 = vpop.xlane.xlu1 %1009  ;;  %1155 = vmatpush.bf16.msra.mxu2 %v1146_v54 }
 0x1ec   : > { %v1020_v12 = vmul.f32 1.442695, %v1015_v10  ;;  %v1016_v13 = vsub.f32 %v980_v56, %v1010_v11  ;;  %v1140_v56 = vpack.c.bf16 %v1136_v55, %v1136_v55  ;;  %v1314_v55 = vld [vmem:[%s2575_s14 + $0x68] sm:$0xff] }
 0x1ee   : > { %1764 = vpow2.f32 %v1020_v12  ;;  %v1022_v14 = vmul.f32 1.442695, %v1016_v13  ;;  %v1184_v57 = vsel %vm830_vm0, %v1140_v56, 0 }
 0x1ef   : > { %1193 = vmatpush.bf16.msra.mxu0 %v1184_v57  ;;  %v1323_v57 = vpack.c.bf16 %v1314_v55, %v1313_v52  ;;  %v1761_v55 = vld [vmem:[%s2636_s24] ss:$0 sm:$0xff] }
 0x1f0   : > { %1766 = vpow2.f32 %v1022_v14 }
 0x1f3   : > { %v1013_v15 = vpop.xlane.xlu1 %1012 }
 0x1f4   : > { %v1765_v16 = vpop.eup %1764  ;;  %v1017_v17 = vsub.f32 %v999_v62, %v1013_v15  ;;  %v1141_v62 = vpack.c.bf16 %v1137_v61, %v1137_v61  ;;  %v1322_v61 = vpack.c.bf16 %v1312_v60, %v1311_v59 }
 0x1f5   : > { %v1029_v18 = vsel %vm823_vm1, %v1765_v16, 0.0 }
 0x1f6   : > { %v1767_v19 = vpop.eup %1766  ;;  %v1024_v20 = vmul.f32 1.442695, %v1017_v17  ;;  %1030 = vadd.xlane.f32.xlu2 %v1029_v18  ;;  %v1203_v63 = vsel %vm830_vm0, %v1141_v62, 0  ;;  %v1309_v62 = vld [vmem:[%s2575_s14 + $0x40] sm:$0xff] }
 0x1f7   : > { %v1032_v21 = vsel %vm823_vm1, %v1767_v19, 0.0  ;;  %1212 = vmatpush.bf16.msrb.mxu1 %v1203_v63  ;;  %v1310_v63 = vld [vmem:[%s2575_s14 + $0x48] sm:$0xff] }
 0x1f8   : > { %1768 = vpow2.f32 %v1024_v20  ;;  %1033 = vadd.xlane.f32.xlu0 %v1032_v21 }
 0x1fe   : > { %v1769_v22 = vpop.eup %1768 }
 0x1ff   : > { %v1035_v23 = vsel %vm823_vm1, %v1769_v22, 0.0 }
 0x200   : > { %1036 = vadd.xlane.f32.xlu1 %v1035_v23  ;;  %v1755_v23 = vld [vmem:[%s2570_s9] ss:$0 sm:$0xff] }
 0x25b   : > { %v1028_v36 = vpop.xlane.xlu2 %1027 }
 0x25c   : > { %1770 = vrcp.f32 %v1028_v36 }
 0x262   : > { %v1771_v37 = vpop.eup %1770 }
 0x263   : > { %v1042_v38 = vmul.f32 %v1771_v37, %v1763_v7 }
 0x265   : > { %v1046_v39 = vpack.c.bf16 %v1042_v38, %v1042_v38 }
 0x267   : > { %1623 = vmatmul.msk.bf16.vlgmr.msrb.gmra.mxu2 %vm823_vm1, %v1046_v39 }
 0x269   : > { %v1031_v40 = vpop.xlane.xlu2 %1030 }
 0x26a   : > { %1772 = vrcp.f32 %v1031_v40 }
 0x26b   : > { %v1034_v41 = vpop.xlane.xlu0 %1033 }
 0x26c   : > { %1774 = vrcp.f32 %v1034_v41 }
 0x270   : > { %v1773_v42 = vpop.eup %1772 }
 0x271   : > { %v1043_v43 = vmul.f32 %v1773_v42, %v1765_v16 }
 0x272   : > { %v1775_v44 = vpop.eup %1774 }
 0x273   : > { %v1044_v45 = vmul.f32 %v1775_v44, %v1767_v19  ;;  %v1037_v46 = vpop.xlane.xlu1 %1036  ;;  %v1047_v47 = vpack.c.bf16 %v1043_v43, %v1043_v43  ;;  %v1275_v44 = vld [vmem:[#allocation13 + $0x10] sm:$0xff] }
 0x274   : > { %1776 = vrcp.f32 %v1037_v46 }
 0x275   : > { %v1048_v48 = vpack.c.bf16 %v1044_v45, %v1044_v45  ;;  %1624 = vmatmul.msk.bf16.vlgmr.msrb.gmra.mxu3 %vm823_vm1, %v1047_v47  ;;  %1778 = vrcp.f32 %v2096_v32  ;;  %v1276_v45 = vld [vmem:[#allocation13 + $0x18] sm:$0xff]  ;;  %v1273_v47 = vld [vmem:[#allocation13] sm:$0xff]  ;;  %v1759_v32 = vld [vmem:[%s2631_s6] ss:$0 sm:$0xff] }
 0x276   : > { %v1278_v46 = vpack.c.bf16 %v1276_v45, %v1275_v44 }
 0x277   : > { %1625 = vmatmul.msk.bf16.vlgmr.msrb.gmra.mxu0 %vm823_vm1, %v1048_v48  ;;  %v1274_v48 = vld [vmem:[#allocation13 + $0x8] sm:$0xff] }
 0x278   : > { %1292 = vmatpush.bf16.msrb.mxu2 %v1278_v46 }
 0x27a   : > { %v1777_v49 = vpop.eup %1776 }
 0x27b   : > { %v1045_v50 = vmul.f32 %v1777_v49, %v1769_v22  ;;  %v1779_v33 = vpop.eup %1778  ;;  %v1277_v49 = vpack.c.bf16 %v1274_v48, %v1273_v47 }
 0x27c   : > { %v1239_v34 = vmul.f32 32.0, %v1779_v33  ;;  %vm1243_vm3 = vweird.f32 %v1779_v33 }
 0x27d   : > { %v1049_v51 = vpack.c.bf16 %v1045_v50, %v1045_v50  ;;  %1293 = vmatpush.bf16.msrb.mxu2 %v1277_v49  ;;  %v1315_v50 = vld [vmem:[%s2575_s14 + $0x70] sm:$0xff] }
 0x27e   : > { %v1240_v35 = vsub.f32 1.0, %v1239_v34 }
 0x27f   : > { %1626 = vmatmul.msk.bf16.vlgmr.msra.gmra.mxu1 %vm823_vm1, %v1049_v51  ;;  %v1316_v51 = vld [vmem:[%s2575_s14 + $0x78] sm:$0xff] }
 0x280   : > { %v1241_v36 = vmul.f32 %v1779_v33, %v1240_v35  ;;  %v1324_v54 = vpack.c.bf16 %v1316_v51, %v1315_v50 }
 0x282   : > { %v1242_v37 = vadd.f32 %v1779_v33, %v1241_v36  ;;  %1329 = vmatpush.bf16.msrb.mxu3 %v1324_v54 }
 0x284   : > { %v2445_v38 = vsel %vm1243_vm3, %v1779_v33, %v1242_v37 }
 0x286   : > { %1330 = vmatpush.bf16.msrb.mxu3 %v1323_v57 }
 0x28a   : > { %1331 = vmatpush.bf16.msrb.mxu3 %v1322_v61 }
 0x2ea   : > { %v1069_v0 = vpop.f32.mrf.mxu2 }
 0x2eb   : > { %v1130_v1 = vpack.c.bf16 %v1069_v0, %v1069_v0  ;;  %v1321_v0 = vpack.c.bf16 %v1310_v63, %v1309_v62 }
 0x2ed   : > { %1627 = vmatmul.msk.bf16.vlgmr.msra.gmra.mxu2 %vm823_vm1, %v1130_v1  ;;  %1332 = vmatpush.bf16.msrb.mxu3 %v1321_v0 }
 0x2f2   : > { %v1071_v2 = vpop.f32.mrf.mxu2 }
 0x2f3   : > { %v1307_v2 = vld [vmem:[%s2575_s14 + $0x30] sm:$0xff] }
 0x2f4   : > { %v1107_v3 = vpop.f32.mrf.mxu0 }
 0x2f5   : > { %v1132_v4 = vpack.c.bf16 %v1107_v3, %v1107_v3  ;;  %v1308_v3 = vld [vmem:[%s2575_s14 + $0x38] sm:$0xff] }
 0x2f7   : > { %1629 = vmatmul.msk.bf16.vlgmr.msra.gmra.mxu0 %vm823_vm1, %v1132_v4 }
 0x2f8   : > { %v1088_v5 = vpop.f32.mrf.mxu3 }
 0x2f9   : > { %v1131_v6 = vpack.c.bf16 %v1088_v5, %v1088_v5 }
 0x2fb   : > { %1628 = vmatmul.msk.bf16.vlgmr.msra.gmra.mxu3 %vm823_vm1, %v1131_v6  ;;  %v1320_v6 = vpack.c.bf16 %v1308_v3, %v1307_v2 }
 0x2fc   : > { %v1109_v7 = vpop.f32.mrf.mxu0  ;;  %v1126_v8 = vpop.f32.mrf.mxu1 }
 0x2fd   : > { %v1133_v9 = vpack.c.bf16 %v1126_v8, %v1126_v8  ;;  %v1305_v7 = vld [vmem:[%s2575_s14 + $0x20] sm:$0xff]  ;;  %v1306_v8 = vld [vmem:[%s2575_s14 + $0x28] sm:$0xff]  ;;  %1333 = vmatpush.bf16.msrb.mxu3 %v1320_v6 }
 0x2ff   : > { %1630 = vmatmul.msk.bf16.vlgmr.msrb.gmra.mxu1 %vm823_vm1, %v1133_v9 }
 0x300   : > { %v1090_v10 = vpop.f32.mrf.mxu3 }
 0x304   : > { %v1128_v11 = vpop.f32.mrf.mxu1 }
 0x305   : > { %v1319_v11 = vpack.c.bf16 %v1306_v8, %v1305_v7 }
 0x307   : > { %1334 = vmatpush.bf16.msrb.mxu3 %v1319_v11 }
 0x370   : > { %v1157_v12 = vpop.f32.mrf.mxu2 }
 0x371   : > { %v1219_v18 = vsel %vm1218_vm2, %v1157_v12, 0.0 }
 0x374   : > { %v1195_v13 = vpop.f32.mrf.mxu0 }
 0x375   : > { %v1222_v21 = vsel %vm1218_vm2, %v1195_v13, 0.0  ;;  %v1756_v13 = vld [vmem:[%s2571_s10] ss:$0 sm:$0xff] }
 0x378   : > { %v1159_v14 = vpop.f32.mrf.mxu2 }
 0x37c   : > { %v1197_v15 = vpop.f32.mrf.mxu0  ;;  %v1214_v16 = vpop.f32.mrf.mxu1 }
 0x37d   : > { %v1224_v24 = vsel %vm1218_vm2, %v1214_v16, 0.0  ;;  %v1757_v15 = vld [vmem:[%s2629_s23] ss:$0 sm:$0xff]  ;;  %s2634_s23 = smov %s2633_s29 }
 0x37e   : > { %v1176_v17 = vpop.f32.mrf.mxu3  ;;  %s2014_s12 = scalar_lea.hbm %s2634_s23, 16  ;;  %p2015_p8 = scmp.lt.s32.totalorder %s2009_s21, %s2634_s23 }
 0x37f   : > { %v1220_v19 = vsel %vm1218_vm2, %v1176_v17, 0.0  ;;  %p2016_p10 = scmp.lt.s32.totalorder %s2014_s12, %s2010_s11 }
 0x380   : > { %v1221_v20 = vadd.f32 %v1220_v19, %v1219_v18 }
 0x381   : > { %p2017_p11 = por %p2016_p10, %p2015_p8 }
 0x382   : > { %v1223_v22 = vadd.f32 %v1222_v21, %v1221_v20  ;;  %v1303_v20 = vld [vmem:[%s2575_s14 + $0x10] sm:$0xff]  ;;  %v1304_v21 = vld [vmem:[%s2575_s14 + $0x18] sm:$0xff] }
 0x383   : > { %p2018_p12 = pnand %p2017_p11, %p2013_p6 }
 0x384   : > { %v1225_v25 = vadd.f32 %v1224_v24, %v1223_v22  ;;  %v1216_v26 = vpop.f32.mrf.mxu1  ;;  %v1318_v22 = vpack.c.bf16 %v1304_v21, %v1303_v20  ;;  %v1302_v24 = vld [vmem:[%s2575_s14 + $0x8] sm:$0xff] }
 0x385   : > { %v1758_v26 = vld [vmem:[%s2630_s5] ss:$0 sm:$0xff] }
 0x386   : > { %v1178_v28 = vpop.f32.mrf.mxu3  ;;  %v1230_v29 = vadd.f32 %v1755_v23, %v1225_v25  ;;  %1335 = vmatpush.bf16.msrb.mxu3 %v1318_v22  ;;  %v1301_v23 = vld [vmem:[%s2575_s14] sm:$0xff] }
 0x387   : > { %v1317_v25 = vpack.c.bf16 %v1302_v24, %v1301_v23 }
 0x388   : > { %v1232_v30 = vadd.f32 %v1231_v27, %v1230_v29 }
 0x38a   : > { %v1235_v31 = vsel %vm1218_vm2, %v1232_v30, 0.0  ;;  %1336 = vmatpush.bf16.msrb.mxu3 %v1317_v25 }
 0x38b   : > { %1236 = vadd.xlane.f32.xlu2 %v1235_v31 }
 0x3fe   : > { %v1237_v39 = vpop.xlane.xlu2 %1236 }
 0x3ff   : > { %v1245_v40 = vmul.f32 %v2445_v38, %v1237_v39 }
 0x401   : > { %v1246_v41 = vsub.f32 %v1232_v30, %v1245_v40 }
 0x403   : > { %v1247_v42 = vmul.f32 %v1246_v41, %v1246_v41 }
 0x405   : > { %v1248_v43 = vsel %vm1218_vm2, %v1247_v42, 0.0 }
 0x406   : > { %1249 = vadd.xlane.f32.xlu0 %v1248_v43 }
 0x479   : > { %v1250_v53 = vpop.xlane.xlu0 %1249 }
 0x47a   : > { %v1251_v56 = vmul.f32 %v1250_v53, %v2445_v38  ;;  %v1760_v53 = vld [vmem:[%s2632_s2] ss:$0 sm:$0xff] }
 0x47c   : > { %v1252_v58 = vadd.f32 1e-05, %v1251_v56 }
 0x47e   : > { %1780 = vrsqrt.f32 %v1252_v58  ;;  %vm1259_vm5 = vweird.f32 %v1252_v58 }
 0x484   : > { %v1781_v1 = vpop.eup %1780 }
 0x485   : > { %v1254_v4 = vmul.f32 %v1781_v1, %v1252_v58  ;;  %vm1260_vm4 = vweird.f32 %v1781_v1 }
 0x486   : > { %vm1261_vm6 = vmor %vm1259_vm5, %vm1260_vm4 }
 0x487   : > { %v1255_v5 = vmul.f32 %v1781_v1, %v1254_v4 }
 0x489   : > { %v1256_v9 = vmul.f32 0.5, %v1255_v5 }
 0x48b   : > { %v1257_v10 = vsub.f32 1.5, %v1256_v9 }
 0x48d   : > { %v1258_v12 = vmul.f32 %v1781_v1, %v1257_v10 }
 0x48f   : > { %v1262_v14 = vsel %vm1261_vm6, %v1781_v1, %v1258_v12 }
 0x490   : > { %v1263_v16 = vmul.f32 %v1262_v14, %v1246_v41 }
 0x492   : > { %v1267_v17 = vmul.f32 %v1756_v13, %v1263_v16 }
 0x494   : > { %v1271_v18 = vadd.f32 %v1757_v15, %v1267_v17 }
 0x496   : > { %v1272_v19 = vpack.c.bf16 %v1271_v18, %v1271_v18 }
 0x498   : > { %1631 = vmatmul.msk.bf16.vlgmr.msrb.gmra.mxu2 %vm1218_vm2, %v1272_v19 }
 0x51b   : > { %v1295_v27 = vpop.f32.mrf.mxu2 }
 0x51c   : > { %v1296_v28 = vadd.f32 %v1758_v26, %v1295_v27 }
 0x51e   : > { %v1299_v29 = vmax.f32 %v1296_v28, 0.0 }
 0x520   : > { %v1300_v30 = vpack.c.bf16 %v1299_v29, %v1299_v29 }
 0x522   : > { %1337 = vmatmul.bf16.vlgmr.msrb.gmra.mxu3 %v1300_v30 }
 0x523   : > { %v1297_v31 = vpop.f32.mrf.mxu2 }
 0x5a5   : > { %v1338_v33 = vpop.f32.mrf.mxu3 }
 0x5a6   : > { %v1339_v34 = vadd.f32 %v1759_v32, %v1338_v33 }
 0x5a8   : > { %v1342_v35 = vadd.f32 %v1339_v34, %v1271_v18 }
 0x5aa   : > { %v1345_v36 = vsel %vm1218_vm2, %v1342_v35, 0.0 }
 0x5ab   : > { %1346 = vadd.xlane.f32.xlu1 %v1345_v36 }
 0x5ad   : > { %v1340_v37 = vpop.f32.mrf.mxu3 }
 0x61e   : > { %v1347_v39 = vpop.xlane.xlu1 %1346 }
 0x61f   : > { %v1348_v40 = vmul.f32 %v1347_v39, %v2445_v38 }
 0x621   : > { %v1349_v41 = vsub.f32 %v1342_v35, %v1348_v40 }
 0x623   : > { %v1350_v42 = vmul.f32 %v1349_v41, %v1349_v41 }
 0x625   : > { %v1351_v43 = vsel %vm1218_vm2, %v1350_v42, 0.0 }
 0x626   : > { %1352 = vadd.xlane.f32.xlu2 %v1351_v43 }
 0x699   : > { %v1353_v44 = vpop.xlane.xlu2 %1352 }
 0x69a   : > { %v1354_v45 = vmul.f32 %v1353_v44, %v2445_v38 }
 0x69c   : > { %v1355_v46 = vadd.f32 1e-05, %v1354_v45 }
 0x69e   : > { %1782 = vrsqrt.f32 %v1355_v46  ;;  %vm1362_vm8 = vweird.f32 %v1355_v46 }
 0x6a4   : > { %v1783_v47 = vpop.eup %1782 }
 0x6a5   : > { %v1357_v48 = vmul.f32 %v1783_v47, %v1355_v46  ;;  %vm1363_vm7 = vweird.f32 %v1783_v47 }
 0x6a6   : > { %vm1364_vm9 = vmor %vm1362_vm8, %vm1363_vm7 }
 0x6a7   : > { %v1358_v49 = vmul.f32 %v1783_v47, %v1357_v48 }
 0x6a9   : > { %v1359_v50 = vmul.f32 0.5, %v1358_v49 }
 0x6ab   : > { %v1360_v51 = vsub.f32 1.5, %v1359_v50 }
 0x6ad   : > { %v1361_v52 = vmul.f32 %v1783_v47, %v1360_v51 }
 0x6af   : > { %v1365_v38 = vsel %vm1364_vm9, %v1783_v47, %v1361_v52 }
 0x6b0   : > { %v1366_v54 = vmul.f32 %v1365_v38, %v1349_v41 }
 0x6b2   : > { %v1370_v56 = vmul.f32 %v1760_v53, %v1366_v54 }
 0x6b4   : > { %v1374_v57 = vadd.f32 %v1761_v55, %v1370_v56 }
 0x6b6   : > { %1375 = vst.msk [vmem:[%s788_s30] sm:$0xff] %vm1218_vm2, %v1374_v57 }
 0x6b7   : > { %2021 = shalt.err (!%p2018_p12)
}
 0x6b8   : > { %1661 = dma.vmem_to_hbm [thread:$0]  (%p2274_p2), %s1391_s1, 128, %s1393_s7, %s1377_s15  }
 0x6b9 PF: > { %s2637_s16 = sld [smem:[#allocation20_spill]] }
 0x6ba   : > { %s2639_s27 = sld [smem:[#allocation22_spill]] }
 0x6bf   : > { %s1404_s19 = sand.u32 1, %s2637_s16  }
 0x6c0   : > { %p2640_p13 = scmp.ge.s32.totalorder %s2639_s27, 2  ;;  %s1405_s2 = scalar_lea.sflag [#allocation4], %s1404_s19 }
 0x6c2   : > { %p1687_p0 = pnand %p2640_p13, %p2281_p7 }
 0x6c4   : > { %p1688_p5 = pneg %p1687_p0 }
 0x6c6   : > { %2063 = dma.done.wait (%p1688_p5), %s1405_s2, 128  }
 0x6c7   : > { %2065 = vsyncadd (%p1688_p5), %s1405_s2, 4294967168  ;;  %s39_s19 = sadd.s32 1, %s2639_s27   ;;  %s2641_s25 = sld [smem:[#allocation21_spill]] }
 0x6c8   : > { %p36_p9 = scmp.ge.s32.totalorder %s39_s19, 4   ;;  %s2642_s29 = sld [smem:[#allocation25_spill]] }
 0x6c9   : > { %s2643_s22 = sld [smem:[#allocation23_spill]]  ;;  %s2644_s27 = smov %s2072_s28 }
 0x6ca   : > { %s2646_s30 = smov %s2084_s0 }
 0x6cb   :  { %38 = sbr.rel (!%p36_p9) target bundleno = 26 (0x1a), region = 183 }
 0x6cd   : > { %s2645_s28 = smov %s2641_s25 }
 0x6cf   : > { %s2647_s0 = smov %s2643_s22 }
 0x6d0   :  { %1411 = vsyncpa [#allocation3], 1 }
 0x6d1   :  { %1413 = vsyncpa [#allocation3 + $0x1], 1 }
 0x6d2   :  { %1414 = vsyncpa [#allocation6], 1 }
 0x6d3   :  { %1416 = vsyncpa [#allocation6 + $0x1], 1 }
 0x6d4   :  { %1417 = vsyncpa [#allocation9], 1 }
 0x6d5   :  { %1418 = vsyncpa [#allocation12], 1 }
 0x6d6   :  { %1419 = vsyncpa [#allocation4], 1 }
 0x6d7   :  { %1421 = vsyncpa [#allocation4 + $0x1], 1 }

</bundles_post_ra>
